<compile_context>
chip_gen: v6e
topology: v6e:2x2x1
jax: 0.10.0
libtpu: 0.0.40
codegen_flags: <defaults>
</compile_context>

<pallas_src>
import functools

import jax
import jax.numpy as jnp
from jax.experimental import pallas as pl
from jax.experimental.pallas import tpu as pltpu

# ----------------------- configuration (small, deterministic) -----------------------
B = 2          # batch
N_TOK = 50     # hard-coded in the PyTorch reshape (B, 50, 3, H, Dh)
DIM = 32       # embedding dim
HEADS = 4
HEAD_DIM = DIM // HEADS
SCALE = HEAD_DIM ** -0.5


# ----------------------------------- Pallas kernel ----------------------------------
def _patch_attn_kernel(*refs, num_heads, head_dim, has_cls, has_pos):
    """Gridless kernel: the whole problem lives in VMEM and runs in one invocation.

    refs (in order): patches, [cls], [pos], wqkv_t, wproj_t, bproj, out
      patches : (B, Np, C) f32   Np = 50 - (1 if has_cls else 0)
      cls     : (B, 1, C)  f32   (present iff has_cls)
      pos     : (1, 50, C) f32   (present iff has_pos)
      wqkv_t  : (C, 3C)    bf16  qkv.weight.T with softmax scale folded into the q columns
      wproj_t : (C, C)     bf16  proj.weight.T
      bproj   : (1, C)     f32   proj bias
      out     : (B, 50, C) f32
    """
    it = iter(refs)
    patches_ref = next(it)
    cls_ref = next(it) if has_cls else None
    pos_ref = next(it) if has_pos else None
    wqkv_ref = next(it)
    wproj_ref = next(it)
    bproj_ref = next(it)
    o_ref = next(it)

    c = num_heads * head_dim
    batch = o_ref.shape[0]

    wqkv = wqkv_ref[...]                                   # (C, 3C) bf16
    wproj = wproj_ref[...]                                 # (C, C)  bf16
    bproj = bproj_ref[...]                                 # (1, C)  f32
    pos = pos_ref[0] if has_pos else None                  # (50, C) f32

    # Static unroll over batch: each per-batch block is indexed on the leading (untiled)
    # axis, so every slice below is tile-aligned (no r0 = b*50 sublane misalignment).
    for b in range(batch):
        # Fused token prep (was a wrapper-side XLA op): [cls ; patches] + pos_embed.
        # pos_drop has p=0 -> identity.
        tokens = patches_ref[b]                                         # (Np, C) f32
        if has_cls:
            tokens = jnp.concatenate([cls_ref[b], tokens], axis=0)      # (50, C) f32
        if has_pos:
            tokens = tokens + pos                                       # (50, C) f32

        # Fused QKV projection: one (50, C) @ (C, 3C) MXU matmul, bf16 operands, f32 accumulate.
        # Softmax scale is pre-folded into the q columns of wqkv.
        qkv = jnp.dot(tokens.astype(jnp.bfloat16), wqkv,
                      preferred_element_type=jnp.float32)               # (50, 3C) f32

        head_outs = []
        for h in range(num_heads):
            c0 = h * head_dim
            q = qkv[:, c0:c0 + head_dim]                                # (50, Dh), pre-scaled
            k = qkv[:, c + c0:c + c0 + head_dim]                        # (50, Dh)
            v = qkv[:, 2 * c + c0:2 * c + c0 + head_dim]                # (50, Dh)

            # q @ k^T without materializing the transpose (contract dim 1 with dim 1).
            s = jax.lax.dot_general(q.astype(jnp.bfloat16), k.astype(jnp.bfloat16),
                                    (((1,), (1,)), ((), ())),
                                    preferred_element_type=jnp.float32)  # (50, 50) f32
            # Stable softmax, strictly float32 elementwise math (v5e has no bf16 VPU/EUP).
            s = s - jnp.max(s, axis=-1, keepdims=True)
            p = jnp.exp(s)
            p = p / jnp.sum(p, axis=-1, keepdims=True)                   # exact denom (free here)

            head_outs.append(jnp.dot(p.astype(jnp.bfloat16), v.astype(jnp.bfloat16),
                                     preferred_element_type=jnp.float32))  # (50, Dh)

        # Head concatenation stays in registers: no VMEM scratch store->load round trip.
        head_cat = jnp.concatenate(head_outs, axis=1)                    # (50, C) f32

        # Fused output projection: one (50, C) @ (C, C) matmul + bias broadcast.
        o_ref[b] = (jnp.dot(head_cat.astype(jnp.bfloat16), wproj,
                            preferred_element_type=jnp.float32)
                    + bproj).astype(o_ref.dtype)


def _attention_pallas(patches, cls_tok, pos, wqkv_t, wproj_t, bproj_2d,
                      *, num_heads, head_dim):
    """patches: (B, Np, C) f32; cls_tok: (B, 1, C) f32 or None; pos: (1, 50, C) f32 or None."""
    b = patches.shape[0]
    c = num_heads * head_dim
    has_cls = cls_tok is not None
    has_pos = pos is not None

    inputs = [patches]
    if has_cls:
        inputs.append(cls_tok)
    if has_pos:
        inputs.append(pos)
    inputs += [wqkv_t, wproj_t, bproj_2d]

    vmem_spec = pl.BlockSpec(memory_space=pltpu.MemorySpace.VMEM)
    kernel = functools.partial(_patch_attn_kernel, num_heads=num_heads, head_dim=head_dim,
                               has_cls=has_cls, has_pos=has_pos)

    # No grid: whole-array VMEM operands, single invocation (removes 1-step grid scaffolding).
    return pl.pallas_call(
        kernel,
        out_shape=jax.ShapeDtypeStruct((b, N_TOK, c), jnp.float32),
        in_specs=[vmem_spec] * len(inputs),
        out_specs=vmem_spec,
    )(*inputs)


# -------------------------------- module-level wrapper -------------------------------
def init_patch_block_params(key, dim=DIM, num_heads=HEADS, qkv_bias=False):
    """Parameter init matching nn.Linear shapes; packs kernel weights ONCE here."""
    del qkv_bias  # PatchBlock default qkv_bias=False -> no qkv bias
    k1, k2, k3 = jax.random.split(key, 3)
    wqkv = jax.random.normal(k1, (3 * dim, dim), jnp.float32) * 0.05   # qkv.weight  (3C, C)
    wproj = jax.random.normal(k2, (dim, dim), jnp.float32) * 0.05      # proj.weight (C, C)
    bproj = jax.random.normal(k3, (dim,), jnp.float32) * 0.05          # proj.bias   (C,)

    head_dim = dim // num_heads
    scale = head_dim ** -0.5
    # Pre-packed kernel operands (hoisted out of the per-call path):
    #   wqkv_t : (C, 3C) = qkv.weight.T, softmax scale folded into the q columns, bf16 MXU operand
    #   wproj_t: (C, C)  = proj.weight.T, bf16 MXU operand
    wqkv_t = jnp.concatenate([wqkv[:dim].T * scale, wqkv[dim:].T], axis=1).astype(jnp.bfloat16)
    wproj_t = wproj.T.astype(jnp.bfloat16)
    bproj_2d = bproj.reshape(1, dim)

    return {"wqkv": wqkv, "wproj": wproj, "bproj": bproj,                 # reference layout (f32)
            "wqkv_t": wqkv_t, "wproj_t": wproj_t, "bproj_2d": bproj_2d,   # kernel layout
            "num_heads": num_heads, "dim": dim, "head_dim": head_dim}


def patch_block_forward(params, x, cls_token=None, pos_embed=None):
    """Mirrors PatchBlock.forward; cls prepend + pos add happen INSIDE the Pallas kernel."""
    if x.ndim > 3:
        patches = x[:, :, 0, :]
    else:
        patches = x
    c = params["dim"]

    cls_tok = None
    if cls_token is not None:
        cls_tok = jnp.squeeze(cls_token, axis=1).astype(jnp.float32)     # (B, 1, C)
    pos = None
    if pos_embed is not None:
        pos = jnp.reshape(pos_embed, (1, N_TOK, c)).astype(jnp.float32)  # (1, 50, C)

    n_total = patches.shape[1] + (0 if cls_tok is None else cls_tok.shape[1])
    assert n_total == N_TOK, "PyTorch module hard-codes a sequence length of 50"
    assert patches.shape[-1] == c

    return _attention_pallas(
        patches.astype(jnp.float32), cls_tok, pos,
        params["wqkv_t"], params["wproj_t"], params["bproj_2d"],
        num_heads=params["num_heads"], head_dim=params["head_dim"])


# --------------------------------- pure-JAX reference --------------------------------
def patch_block_reference(params, x, cls_token=None, pos_embed=None):
    dim = params["dim"]
    nh = params["num_heads"]
    dh = dim // nh

    if x.ndim > 3:
        scaled_x = x[:, :, 0, :]
    else:
        scaled_x = x
    if cls_token is not None:
        scaled_x = jnp.concatenate([jnp.squeeze(cls_token, axis=1), scaled_x], axis=1)
    if pos_embed is not None:
        scaled_x = scaled_x + pos_embed

    b = scaled_x.shape[0]
    qkv = scaled_x @ params["wqkv"].T                       # (B, 50, 3C)
    qkv = qkv.reshape(b, N_TOK, 3, nh, dh).transpose(2, 0, 3, 1, 4)
    q, k, v = qkv[0], qkv[1], qkv[2]                        # (B, H, 50, Dh)
    attn = (q @ jnp.swapaxes(k, -2, -1)) * SCALE
    attn = jax.nn.softmax(attn, axis=-1)
    out = (attn @ v).transpose(0, 2, 1, 3).reshape(b, N_TOK, dim)
    return out @ params["wproj"].T + params["bproj"]


# --------------------------------------- main ----------------------------------------
if __name__ == "__main__":
    key = jax.random.PRNGKey(0)
    k_x, k_cls, k_pos, k_params = jax.random.split(key, 4)

    # x is 4-D -> forward takes x[:, :, 0, :]; 49 patch tokens + 1 cls token = 50.
    x = jax.random.normal(k_x, (B, N_TOK - 1, 3, DIM), jnp.float32)
    cls_token = jax.random.normal(k_cls, (B, 1, 1, DIM), jnp.float32)
    pos_embed = jax.random.normal(k_pos, (1, N_TOK, DIM), jnp.float32) * 0.02

    params = init_patch_block_params(k_params)

    out = patch_block_forward(params, x, cls_token=cls_token, pos_embed=pos_embed)
    out = jax.block_until_ready(out)

    ref = patch_block_reference(params, x, cls_token=cls_token, pos_embed=pos_embed)
    assert out.shape == (B, N_TOK, DIM)
    # bf16 MXU operands (f32 accumulation / softmax) -> slightly relaxed tolerance vs f32 reference
    assert jnp.allclose(out, ref, rtol=2e-3, atol=2e-3), "Pallas output mismatch vs reference"

    print("KERNEL_OK")
</pallas_src>

<mosaic_0001>
module attributes {stable_mosaic.version = 11 : i64} {
  func.func @_patch_attn_kernel(%arg0: memref<2x49x32xf32, #tpu.memory_space<vmem>>, %arg1: memref<2x1x32xf32, #tpu.memory_space<vmem>>, %arg2: memref<1x50x32xf32, #tpu.memory_space<vmem>>, %arg3: memref<32x96xbf16, #tpu.memory_space<vmem>>, %arg4: memref<32x32xbf16, #tpu.memory_space<vmem>>, %arg5: memref<1x32xf32, #tpu.memory_space<vmem>>, %arg6: memref<2x50x32xf32, #tpu.memory_space<vmem>>) attributes {dimension_semantics = [], scalar_prefetch = 0 : i64, scratch_operands = 0 : i64, tpu.core_type = #tpu.core_type<tc>} {
    %c0 = arith.constant 0 : index
    %c0_0 = arith.constant 0 : index
    %0 = vector.load %arg3[%c0, %c0_0] : memref<32x96xbf16, #tpu.memory_space<vmem>>, vector<32x96xbf16>
    %c0_1 = arith.constant 0 : index
    %c0_2 = arith.constant 0 : index
    %1 = vector.load %arg4[%c0_1, %c0_2] : memref<32x32xbf16, #tpu.memory_space<vmem>>, vector<32x32xbf16>
    %c0_3 = arith.constant 0 : index
    %c0_4 = arith.constant 0 : index
    %2 = vector.load %arg5[%c0_3, %c0_4] : memref<1x32xf32, #tpu.memory_space<vmem>>, vector<1x32xf32>
    %c0_5 = arith.constant 0 : index
    %c0_6 = arith.constant 0 : index
    %c0_7 = arith.constant 0 : index
    %3 = vector.load %arg2[%c0_5, %c0_6, %c0_7] : memref<1x50x32xf32, #tpu.memory_space<vmem>>, vector<1x50x32xf32>
    %4 = vector.shape_cast %3 : vector<1x50x32xf32> to vector<50x32xf32>
    %c0_8 = arith.constant 0 : index
    %c0_9 = arith.constant 0 : index
    %c0_10 = arith.constant 0 : index
    %5 = vector.load %arg0[%c0_8, %c0_9, %c0_10] : memref<2x49x32xf32, #tpu.memory_space<vmem>>, vector<1x49x32xf32>
    %6 = vector.shape_cast %5 : vector<1x49x32xf32> to vector<49x32xf32>
    %c0_11 = arith.constant 0 : index
    %c0_12 = arith.constant 0 : index
    %c0_13 = arith.constant 0 : index
    %7 = vector.load %arg1[%c0_11, %c0_12, %c0_13] : memref<2x1x32xf32, #tpu.memory_space<vmem>>, vector<1x1x32xf32>
    %8 = vector.shape_cast %7 : vector<1x1x32xf32> to vector<1x32xf32>
    %9 = tpu.concatenate %8, %6 in 0 : vector<1x32xf32>, vector<49x32xf32> -> vector<50x32xf32>
    %10 = arith.addf %9, %4 : vector<50x32xf32>
    %11 = arith.truncf %10 : vector<50x32xf32> to vector<50x32xbf16>
    %cst = arith.constant dense<0.000000e+00> : vector<50x96xf32>
    %12 = tpu.matmul %11, %0, %cst {dimension_numbers = #tpu.dot_dimension_numbers<[1], [0], [0], [1], [0, 0, 1, 1], [], []>} : vector<50x32xbf16>, vector<32x96xbf16>, vector<50x96xf32> -> vector<50x96xf32>
    %13 = vector.extract_strided_slice %12 {offsets = [0, 0], sizes = [50, 8], strides = [1, 1]} : vector<50x96xf32> to vector<50x8xf32>
    %14 = vector.extract_strided_slice %12 {offsets = [0, 32], sizes = [50, 8], strides = [1, 1]} : vector<50x96xf32> to vector<50x8xf32>
    %15 = vector.extract_strided_slice %12 {offsets = [0, 64], sizes = [50, 8], strides = [1, 1]} : vector<50x96xf32> to vector<50x8xf32>
    %16 = arith.truncf %13 : vector<50x8xf32> to vector<50x8xbf16>
    %17 = arith.truncf %14 : vector<50x8xf32> to vector<50x8xbf16>
    %cst_14 = arith.constant dense<0.000000e+00> : vector<50x50xf32>
    %18 = tpu.matmul %16, %17, %cst_14 {dimension_numbers = #tpu.dot_dimension_numbers<[1], [1], [0], [0], [0, 0, 1, 0], [], []>} : vector<50x8xbf16>, vector<50x8xbf16>, vector<50x50xf32> -> vector<50x50xf32>
    %cst_15 = arith.constant dense<0xFF800000> : vector<50xf32>
    %19 = vector.multi_reduction <maximumf>, %18, %cst_15 [1] : vector<50x50xf32> to vector<50xf32>
    %20 = vector.shape_cast %19 : vector<50xf32> to vector<50x1xf32>
    %21 = vector.broadcast %20 : vector<50x1xf32> to vector<50x50xf32>
    %22 = arith.subf %18, %21 : vector<50x50xf32>
    %23 = math.exp %22 : vector<50x50xf32>
    %cst_16 = arith.constant dense<0.000000e+00> : vector<50xf32>
    %24 = vector.multi_reduction <add>, %23, %cst_16 [1] : vector<50x50xf32> to vector<50xf32>
    %25 = vector.shape_cast %24 : vector<50xf32> to vector<50x1xf32>
    %26 = vector.broadcast %25 : vector<50x1xf32> to vector<50x50xf32>
    %27 = arith.divf %23, %26 : vector<50x50xf32>
    %28 = arith.truncf %27 : vector<50x50xf32> to vector<50x50xbf16>
    %29 = arith.truncf %15 : vector<50x8xf32> to vector<50x8xbf16>
    %cst_17 = arith.constant dense<0.000000e+00> : vector<50x8xf32>
    %30 = tpu.matmul %28, %29, %cst_17 {dimension_numbers = #tpu.dot_dimension_numbers<[1], [0], [0], [1], [0, 0, 1, 1], [], []>} : vector<50x50xbf16>, vector<50x8xbf16>, vector<50x8xf32> -> vector<50x8xf32>
    %31 = vector.extract_strided_slice %12 {offsets = [0, 8], sizes = [50, 8], strides = [1, 1]} : vector<50x96xf32> to vector<50x8xf32>
    %32 = vector.extract_strided_slice %12 {offsets = [0, 40], sizes = [50, 8], strides = [1, 1]} : vector<50x96xf32> to vector<50x8xf32>
    %33 = vector.extract_strided_slice %12 {offsets = [0, 72], sizes = [50, 8], strides = [1, 1]} : vector<50x96xf32> to vector<50x8xf32>
    %34 = arith.truncf %31 : vector<50x8xf32> to vector<50x8xbf16>
    %35 = arith.truncf %32 : vector<50x8xf32> to vector<50x8xbf16>
    %cst_18 = arith.constant dense<0.000000e+00> : vector<50x50xf32>
    %36 = tpu.matmul %34, %35, %cst_18 {dimension_numbers = #tpu.dot_dimension_numbers<[1], [1], [0], [0], [0, 0, 1, 0], [], []>} : vector<50x8xbf16>, vector<50x8xbf16>, vector<50x50xf32> -> vector<50x50xf32>
    %cst_19 = arith.constant dense<0xFF800000> : vector<50xf32>
    %37 = vector.multi_reduction <maximumf>, %36, %cst_19 [1] : vector<50x50xf32> to vector<50xf32>
    %38 = vector.shape_cast %37 : vector<50xf32> to vector<50x1xf32>
    %39 = vector.broadcast %38 : vector<50x1xf32> to vector<50x50xf32>
    %40 = arith.subf %36, %39 : vector<50x50xf32>
    %41 = math.exp %40 : vector<50x50xf32>
    %cst_20 = arith.constant dense<0.000000e+00> : vector<50xf32>
    %42 = vector.multi_reduction <add>, %41, %cst_20 [1] : vector<50x50xf32> to vector<50xf32>
    %43 = vector.shape_cast %42 : vector<50xf32> to vector<50x1xf32>
    %44 = vector.broadcast %43 : vector<50x1xf32> to vector<50x50xf32>
    %45 = arith.divf %41, %44 : vector<50x50xf32>
    %46 = arith.truncf %45 : vector<50x50xf32> to vector<50x50xbf16>
    %47 = arith.truncf %33 : vector<50x8xf32> to vector<50x8xbf16>
    %cst_21 = arith.constant dense<0.000000e+00> : vector<50x8xf32>
    %48 = tpu.matmul %46, %47, %cst_21 {dimension_numbers = #tpu.dot_dimension_numbers<[1], [0], [0], [1], [0, 0, 1, 1], [], []>} : vector<50x50xbf16>, vector<50x8xbf16>, vector<50x8xf32> -> vector<50x8xf32>
    %49 = vector.extract_strided_slice %12 {offsets = [0, 16], sizes = [50, 8], strides = [1, 1]} : vector<50x96xf32> to vector<50x8xf32>
    %50 = vector.extract_strided_slice %12 {offsets = [0, 48], sizes = [50, 8], strides = [1, 1]} : vector<50x96xf32> to vector<50x8xf32>
    %51 = vector.extract_strided_slice %12 {offsets = [0, 80], sizes = [50, 8], strides = [1, 1]} : vector<50x96xf32> to vector<50x8xf32>
    %52 = arith.truncf %49 : vector<50x8xf32> to vector<50x8xbf16>
    %53 = arith.truncf %50 : vector<50x8xf32> to vector<50x8xbf16>
    %cst_22 = arith.constant dense<0.000000e+00> : vector<50x50xf32>
    %54 = tpu.matmul %52, %53, %cst_22 {dimension_numbers = #tpu.dot_dimension_numbers<[1], [1], [0], [0], [0, 0, 1, 0], [], []>} : vector<50x8xbf16>, vector<50x8xbf16>, vector<50x50xf32> -> vector<50x50xf32>
    %cst_23 = arith.constant dense<0xFF800000> : vector<50xf32>
    %55 = vector.multi_reduction <maximumf>, %54, %cst_23 [1] : vector<50x50xf32> to vector<50xf32>
    %56 = vector.shape_cast %55 : vector<50xf32> to vector<50x1xf32>
    %57 = vector.broadcast %56 : vector<50x1xf32> to vector<50x50xf32>
    %58 = arith.subf %54, %57 : vector<50x50xf32>
    %59 = math.exp %58 : vector<50x50xf32>
    %cst_24 = arith.constant dense<0.000000e+00> : vector<50xf32>
    %60 = vector.multi_reduction <add>, %59, %cst_24 [1] : vector<50x50xf32> to vector<50xf32>
    %61 = vector.shape_cast %60 : vector<50xf32> to vector<50x1xf32>
    %62 = vector.broadcast %61 : vector<50x1xf32> to vector<50x50xf32>
    %63 = arith.divf %59, %62 : vector<50x50xf32>
    %64 = arith.truncf %63 : vector<50x50xf32> to vector<50x50xbf16>
    %65 = arith.truncf %51 : vector<50x8xf32> to vector<50x8xbf16>
    %cst_25 = arith.constant dense<0.000000e+00> : vector<50x8xf32>
    %66 = tpu.matmul %64, %65, %cst_25 {dimension_numbers = #tpu.dot_dimension_numbers<[1], [0], [0], [1], [0, 0, 1, 1], [], []>} : vector<50x50xbf16>, vector<50x8xbf16>, vector<50x8xf32> -> vector<50x8xf32>
    %67 = vector.extract_strided_slice %12 {offsets = [0, 24], sizes = [50, 8], strides = [1, 1]} : vector<50x96xf32> to vector<50x8xf32>
    %68 = vector.extract_strided_slice %12 {offsets = [0, 56], sizes = [50, 8], strides = [1, 1]} : vector<50x96xf32> to vector<50x8xf32>
    %69 = vector.extract_strided_slice %12 {offsets = [0, 88], sizes = [50, 8], strides = [1, 1]} : vector<50x96xf32> to vector<50x8xf32>
    %70 = arith.truncf %67 : vector<50x8xf32> to vector<50x8xbf16>
    %71 = arith.truncf %68 : vector<50x8xf32> to vector<50x8xbf16>
    %cst_26 = arith.constant dense<0.000000e+00> : vector<50x50xf32>
    %72 = tpu.matmul %70, %71, %cst_26 {dimension_numbers = #tpu.dot_dimension_numbers<[1], [1], [0], [0], [0, 0, 1, 0], [], []>} : vector<50x8xbf16>, vector<50x8xbf16>, vector<50x50xf32> -> vector<50x50xf32>
    %cst_27 = arith.constant dense<0xFF800000> : vector<50xf32>
    %73 = vector.multi_reduction <maximumf>, %72, %cst_27 [1] : vector<50x50xf32> to vector<50xf32>
    %74 = vector.shape_cast %73 : vector<50xf32> to vector<50x1xf32>
    %75 = vector.broadcast %74 : vector<50x1xf32> to vector<50x50xf32>
    %76 = arith.subf %72, %75 : vector<50x50xf32>
    %77 = math.exp %76 : vector<50x50xf32>
    %cst_28 = arith.constant dense<0.000000e+00> : vector<50xf32>
    %78 = vector.multi_reduction <add>, %77, %cst_28 [1] : vector<50x50xf32> to vector<50xf32>
    %79 = vector.shape_cast %78 : vector<50xf32> to vector<50x1xf32>
    %80 = vector.broadcast %79 : vector<50x1xf32> to vector<50x50xf32>
    %81 = arith.divf %77, %80 : vector<50x50xf32>
    %82 = arith.truncf %81 : vector<50x50xf32> to vector<50x50xbf16>
    %83 = arith.truncf %69 : vector<50x8xf32> to vector<50x8xbf16>
    %cst_29 = arith.constant dense<0.000000e+00> : vector<50x8xf32>
    %84 = tpu.matmul %82, %83, %cst_29 {dimension_numbers = #tpu.dot_dimension_numbers<[1], [0], [0], [1], [0, 0, 1, 1], [], []>} : vector<50x50xbf16>, vector<50x8xbf16>, vector<50x8xf32> -> vector<50x8xf32>
    %85 = tpu.concatenate %30, %48, %66, %84 in 1 : vector<50x8xf32>, vector<50x8xf32>, vector<50x8xf32>, vector<50x8xf32> -> vector<50x32xf32>
    %86 = arith.truncf %85 : vector<50x32xf32> to vector<50x32xbf16>
    %cst_30 = arith.constant dense<0.000000e+00> : vector<50x32xf32>
    %87 = tpu.matmul %86, %1, %cst_30 {dimension_numbers = #tpu.dot_dimension_numbers<[1], [0], [0], [1], [0, 0, 1, 1], [], []>} : vector<50x32xbf16>, vector<32x32xbf16>, vector<50x32xf32> -> vector<50x32xf32>
    %88 = vector.broadcast %2 : vector<1x32xf32> to vector<50x32xf32>
    %89 = arith.addf %87, %88 : vector<50x32xf32>
    %c0_31 = arith.constant 0 : index
    %c0_32 = arith.constant 0 : index
    %c0_33 = arith.constant 0 : index
    %90 = vector.load %arg6[%c0_31, %c0_32, %c0_33] : memref<2x50x32xf32, #tpu.memory_space<vmem>>, vector<1x50x32xf32>
    %91 = vector.shape_cast %90 : vector<1x50x32xf32> to vector<50x32xf32>
    %92 = vector.shape_cast %89 : vector<50x32xf32> to vector<1x50x32xf32>
    tpu.vector_store %arg6[%c0_31, %c0_32, %c0_33], %92 {strides = array<i32>} : memref<2x50x32xf32, #tpu.memory_space<vmem>>, vector<1x50x32xf32>,
    %c1 = arith.constant 1 : index
    %c0_34 = arith.constant 0 : index
    %c0_35 = arith.constant 0 : index
    %93 = vector.load %arg0[%c1, %c0_34, %c0_35] : memref<2x49x32xf32, #tpu.memory_space<vmem>>, vector<1x49x32xf32>
    %94 = vector.shape_cast %93 : vector<1x49x32xf32> to vector<49x32xf32>
    %c1_36 = arith.constant 1 : index
    %c0_37 = arith.constant 0 : index
    %c0_38 = arith.constant 0 : index
    %95 = vector.load %arg1[%c1_36, %c0_37, %c0_38] : memref<2x1x32xf32, #tpu.memory_space<vmem>>, vector<1x1x32xf32>
    %96 = vector.shape_cast %95 : vector<1x1x32xf32> to vector<1x32xf32>
    %97 = tpu.concatenate %96, %94 in 0 : vector<1x32xf32>, vector<49x32xf32> -> vector<50x32xf32>
    %98 = arith.addf %97, %4 : vector<50x32xf32>
    %99 = arith.truncf %98 : vector<50x32xf32> to vector<50x32xbf16>
    %cst_39 = arith.constant dense<0.000000e+00> : vector<50x96xf32>
    %100 = tpu.matmul %99, %0, %cst_39 {dimension_numbers = #tpu.dot_dimension_numbers<[1], [0], [0], [1], [0, 0, 1, 1], [], []>} : vector<50x32xbf16>, vector<32x96xbf16>, vector<50x96xf32> -> vector<50x96xf32>
    %101 = vector.extract_strided_slice %100 {offsets = [0, 0], sizes = [50, 8], strides = [1, 1]} : vector<50x96xf32> to vector<50x8xf32>
    %102 = vector.extract_strided_slice %100 {offsets = [0, 32], sizes = [50, 8], strides = [1, 1]} : vector<50x96xf32> to vector<50x8xf32>
    %103 = vector.extract_strided_slice %100 {offsets = [0, 64], sizes = [50, 8], strides = [1, 1]} : vector<50x96xf32> to vector<50x8xf32>
    %104 = arith.truncf %101 : vector<50x8xf32> to vector<50x8xbf16>
    %105 = arith.truncf %102 : vector<50x8xf32> to vector<50x8xbf16>
    %cst_40 = arith.constant dense<0.000000e+00> : vector<50x50xf32>
    %106 = tpu.matmul %104, %105, %cst_40 {dimension_numbers = #tpu.dot_dimension_numbers<[1], [1], [0], [0], [0, 0, 1, 0], [], []>} : vector<50x8xbf16>, vector<50x8xbf16>, vector<50x50xf32> -> vector<50x50xf32>
    %cst_41 = arith.constant dense<0xFF800000> : vector<50xf32>
    %107 = vector.multi_reduction <maximumf>, %106, %cst_41 [1] : vector<50x50xf32> to vector<50xf32>
    %108 = vector.shape_cast %107 : vector<50xf32> to vector<50x1xf32>
    %109 = vector.broadcast %108 : vector<50x1xf32> to vector<50x50xf32>
    %110 = arith.subf %106, %109 : vector<50x50xf32>
    %111 = math.exp %110 : vector<50x50xf32>
    %cst_42 = arith.constant dense<0.000000e+00> : vector<50xf32>
    %112 = vector.multi_reduction <add>, %111, %cst_42 [1] : vector<50x50xf32> to vector<50xf32>
    %113 = vector.shape_cast %112 : vector<50xf32> to vector<50x1xf32>
    %114 = vector.broadcast %113 : vector<50x1xf32> to vector<50x50xf32>
    %115 = arith.divf %111, %114 : vector<50x50xf32>
    %116 = arith.truncf %115 : vector<50x50xf32> to vector<50x50xbf16>
    %117 = arith.truncf %103 : vector<50x8xf32> to vector<50x8xbf16>
    %cst_43 = arith.constant dense<0.000000e+00> : vector<50x8xf32>
    %118 = tpu.matmul %116, %117, %cst_43 {dimension_numbers = #tpu.dot_dimension_numbers<[1], [0], [0], [1], [0, 0, 1, 1], [], []>} : vector<50x50xbf16>, vector<50x8xbf16>, vector<50x8xf32> -> vector<50x8xf32>
    %119 = vector.extract_strided_slice %100 {offsets = [0, 8], sizes = [50, 8], strides = [1, 1]} : vector<50x96xf32> to vector<50x8xf32>
    %120 = vector.extract_strided_slice %100 {offsets = [0, 40], sizes = [50, 8], strides = [1, 1]} : vector<50x96xf32> to vector<50x8xf32>
    %121 = vector.extract_strided_slice %100 {offsets = [0, 72], sizes = [50, 8], strides = [1, 1]} : vector<50x96xf32> to vector<50x8xf32>
    %122 = arith.truncf %119 : vector<50x8xf32> to vector<50x8xbf16>
    %123 = arith.truncf %120 : vector<50x8xf32> to vector<50x8xbf16>
    %cst_44 = arith.constant dense<0.000000e+00> : vector<50x50xf32>
    %124 = tpu.matmul %122, %123, %cst_44 {dimension_numbers = #tpu.dot_dimension_numbers<[1], [1], [0], [0], [0, 0, 1, 0], [], []>} : vector<50x8xbf16>, vector<50x8xbf16>, vector<50x50xf32> -> vector<50x50xf32>
    %cst_45 = arith.constant dense<0xFF800000> : vector<50xf32>
    %125 = vector.multi_reduction <maximumf>, %124, %cst_45 [1] : vector<50x50xf32> to vector<50xf32>
    %126 = vector.shape_cast %125 : vector<50xf32> to vector<50x1xf32>
    %127 = vector.broadcast %126 : vector<50x1xf32> to vector<50x50xf32>
    %128 = arith.subf %124, %127 : vector<50x50xf32>
    %129 = math.exp %128 : vector<50x50xf32>
    %cst_46 = arith.constant dense<0.000000e+00> : vector<50xf32>
    %130 = vector.multi_reduction <add>, %129, %cst_46 [1] : vector<50x50xf32> to vector<50xf32>
    %131 = vector.shape_cast %130 : vector<50xf32> to vector<50x1xf32>
    %132 = vector.broadcast %131 : vector<50x1xf32> to vector<50x50xf32>
    %133 = arith.divf %129, %132 : vector<50x50xf32>
    %134 = arith.truncf %133 : vector<50x50xf32> to vector<50x50xbf16>
    %135 = arith.truncf %121 : vector<50x8xf32> to vector<50x8xbf16>
    %cst_47 = arith.constant dense<0.000000e+00> : vector<50x8xf32>
    %136 = tpu.matmul %134, %135, %cst_47 {dimension_numbers = #tpu.dot_dimension_numbers<[1], [0], [0], [1], [0, 0, 1, 1], [], []>} : vector<50x50xbf16>, vector<50x8xbf16>, vector<50x8xf32> -> vector<50x8xf32>
    %137 = vector.extract_strided_slice %100 {offsets = [0, 16], sizes = [50, 8], strides = [1, 1]} : vector<50x96xf32> to vector<50x8xf32>
    %138 = vector.extract_strided_slice %100 {offsets = [0, 48], sizes = [50, 8], strides = [1, 1]} : vector<50x96xf32> to vector<50x8xf32>
    %139 = vector.extract_strided_slice %100 {offsets = [0, 80], sizes = [50, 8], strides = [1, 1]} : vector<50x96xf32> to vector<50x8xf32>
    %140 = arith.truncf %137 : vector<50x8xf32> to vector<50x8xbf16>
    %141 = arith.truncf %138 : vector<50x8xf32> to vector<50x8xbf16>
    %cst_48 = arith.constant dense<0.000000e+00> : vector<50x50xf32>
    %142 = tpu.matmul %140, %141, %cst_48 {dimension_numbers = #tpu.dot_dimension_numbers<[1], [1], [0], [0], [0, 0, 1, 0], [], []>} : vector<50x8xbf16>, vector<50x8xbf16>, vector<50x50xf32> -> vector<50x50xf32>
    %cst_49 = arith.constant dense<0xFF800000> : vector<50xf32>
    %143 = vector.multi_reduction <maximumf>, %142, %cst_49 [1] : vector<50x50xf32> to vector<50xf32>
    %144 = vector.shape_cast %143 : vector<50xf32> to vector<50x1xf32>
    %145 = vector.broadcast %144 : vector<50x1xf32> to vector<50x50xf32>
    %146 = arith.subf %142, %145 : vector<50x50xf32>
    %147 = math.exp %146 : vector<50x50xf32>
    %cst_50 = arith.constant dense<0.000000e+00> : vector<50xf32>
    %148 = vector.multi_reduction <add>, %147, %cst_50 [1] : vector<50x50xf32> to vector<50xf32>
    %149 = vector.shape_cast %148 : vector<50xf32> to vector<50x1xf32>
    %150 = vector.broadcast %149 : vector<50x1xf32> to vector<50x50xf32>
    %151 = arith.divf %147, %150 : vector<50x50xf32>
    %152 = arith.truncf %151 : vector<50x50xf32> to vector<50x50xbf16>
    %153 = arith.truncf %139 : vector<50x8xf32> to vector<50x8xbf16>
    %cst_51 = arith.constant dense<0.000000e+00> : vector<50x8xf32>
    %154 = tpu.matmul %152, %153, %cst_51 {dimension_numbers = #tpu.dot_dimension_numbers<[1], [0], [0], [1], [0, 0, 1, 1], [], []>} : vector<50x50xbf16>, vector<50x8xbf16>, vector<50x8xf32> -> vector<50x8xf32>
    %155 = vector.extract_strided_slice %100 {offsets = [0, 24], sizes = [50, 8], strides = [1, 1]} : vector<50x96xf32> to vector<50x8xf32>
    %156 = vector.extract_strided_slice %100 {offsets = [0, 56], sizes = [50, 8], strides = [1, 1]} : vector<50x96xf32> to vector<50x8xf32>
    %157 = vector.extract_strided_slice %100 {offsets = [0, 88], sizes = [50, 8], strides = [1, 1]} : vector<50x96xf32> to vector<50x8xf32>
    %158 = arith.truncf %155 : vector<50x8xf32> to vector<50x8xbf16>
    %159 = arith.truncf %156 : vector<50x8xf32> to vector<50x8xbf16>
    %cst_52 = arith.constant dense<0.000000e+00> : vector<50x50xf32>
    %160 = tpu.matmul %158, %159, %cst_52 {dimension_numbers = #tpu.dot_dimension_numbers<[1], [1], [0], [0], [0, 0, 1, 0], [], []>} : vector<50x8xbf16>, vector<50x8xbf16>, vector<50x50xf32> -> vector<50x50xf32>
    %cst_53 = arith.constant dense<0xFF800000> : vector<50xf32>
    %161 = vector.multi_reduction <maximumf>, %160, %cst_53 [1] : vector<50x50xf32> to vector<50xf32>
    %162 = vector.shape_cast %161 : vector<50xf32> to vector<50x1xf32>
    %163 = vector.broadcast %162 : vector<50x1xf32> to vector<50x50xf32>
    %164 = arith.subf %160, %163 : vector<50x50xf32>
    %165 = math.exp %164 : vector<50x50xf32>
    %cst_54 = arith.constant dense<0.000000e+00> : vector<50xf32>
    %166 = vector.multi_reduction <add>, %165, %cst_54 [1] : vector<50x50xf32> to vector<50xf32>
    %167 = vector.shape_cast %166 : vector<50xf32> to vector<50x1xf32>
    %168 = vector.broadcast %167 : vector<50x1xf32> to vector<50x50xf32>
    %169 = arith.divf %165, %168 : vector<50x50xf32>
    %170 = arith.truncf %169 : vector<50x50xf32> to vector<50x50xbf16>
    %171 = arith.truncf %157 : vector<50x8xf32> to vector<50x8xbf16>
    %cst_55 = arith.constant dense<0.000000e+00> : vector<50x8xf32>
    %172 = tpu.matmul %170, %171, %cst_55 {dimension_numbers = #tpu.dot_dimension_numbers<[1], [0], [0], [1], [0, 0, 1, 1], [], []>} : vector<50x50xbf16>, vector<50x8xbf16>, vector<50x8xf32> -> vector<50x8xf32>
    %173 = tpu.concatenate %118, %136, %154, %172 in 1 : vector<50x8xf32>, vector<50x8xf32>, vector<50x8xf32>, vector<50x8xf32> -> vector<50x32xf32>
    %174 = arith.truncf %173 : vector<50x32xf32> to vector<50x32xbf16>
    %cst_56 = arith.constant dense<0.000000e+00> : vector<50x32xf32>
    %175 = tpu.matmul %174, %1, %cst_56 {dimension_numbers = #tpu.dot_dimension_numbers<[1], [0], [0], [1], [0, 0, 1, 1], [], []>} : vector<50x32xbf16>, vector<32x32xbf16>, vector<50x32xf32> -> vector<50x32xf32>
    %176 = vector.broadcast %2 : vector<1x32xf32> to vector<50x32xf32>
    %177 = arith.addf %175, %176 : vector<50x32xf32>
    %c1_57 = arith.constant 1 : index
    %c0_58 = arith.constant 0 : index
    %c0_59 = arith.constant 0 : index
    %178 = vector.load %arg6[%c1_57, %c0_58, %c0_59] : memref<2x50x32xf32, #tpu.memory_space<vmem>>, vector<1x50x32xf32>
    %179 = vector.shape_cast %178 : vector<1x50x32xf32> to vector<50x32xf32>
    %180 = vector.shape_cast %177 : vector<50x32xf32> to vector<1x50x32xf32>
    tpu.vector_store %arg6[%c1_57, %c0_58, %c0_59], %180 {strides = array<i32>} : memref<2x50x32xf32, #tpu.memory_space<vmem>>, vector<1x50x32xf32>,
    return
  }
}

</mosaic_0001>

<bundles_post_ra>
// kernel: tpu_custom_call.1
= control target key start
LH: loop header
LB: loop body
LE: loop exit
PB: predicated region body
PF: predicated region fallthrough
CT: control target
= control target key end

     0   :  { %vm55_vm0 = vcmask 1040384   ;;  %vm100_vm1 = vcmask 261120   ;;  %vm193_vm2 = vcmask 64512   ;;  %s3852_s16 = smov 96   ;;  %vm282_vm3 = vcmask 408576   ;;  %s3853_s17 = smov 64   ;;  %s4923_s3 = inlined_call_operand.vmem [shape: bf16[32,96], index: 3, kind: input, shape index: {}]   ;;  %s4924_s0 = inlined_call_operand.vmem [shape: f32[2,49,32], index: 0, kind: input, shape index: {}]   ;;  %s4925_s2 = inlined_call_operand.vmem [shape: f32[1,50,32], index: 2, kind: input, shape index: {}]   ;;  %s4926_s1 = inlined_call_operand.vmem [shape: f32[2,1,32], index: 1, kind: input, shape index: {}]   ;;  %s4927_s4 = inlined_call_operand.vmem [shape: bf16[32,32], index: 4, kind: input, shape index: {}]   ;;  %s4928_s5 = inlined_call_operand.vmem [shape: f32[1,32], index: 5, kind: input, shape index: {}]   ;;  %s4929_s6 = inlined_call_operand.vmem [shape: f32[2,50,32], index: 6, kind: output, shape index: {}]  }
   0x1   :  { %v3615_v0 = vld [vmem:[%s4923_s3 + $0x8] sm:$0xff]   ;;  %v3616_v1 = vld [vmem:[%s4923_s3] sm:$0xff]   ;;  %v3922_v7 = vld [vmem:[%s4924_s0 + $0x38] sm:$0xff]  ;;  %vm301_vm4 = vcmask 402432   ;;  %s3854_s18 = smov 88   ;;  %s3855_s19 = smov 120  }
   0x2   :  { %3167 = vmatprep.subr.bf16.mxu0 %v3615_v0  ;;  %v33_v2 = vld [vmem:[%s4925_s2] sm:$0xff]  ;;  %v41_v4 = vld [vmem:[%s4924_s0 + $0x8] sm:$0xff]  ;;  %v1510_v12 = vrot.slane %v3922_v7, 7  ;;  %v42_v15 = vld [vmem:[%s4924_s0 + $0x10] sm:$0xff]  ;;  %s3856_s20 = smov 56   ;;  %s3858_s21 = smov 112  }
   0x3   :  { %v40_v3 = vld [vmem:[%s4924_s0] sm:$0xff]  ;;  %3168 = vmatpush3.bf16.msra.mxu0 %v3615_v0  ;;  %v34_v8 = vld [vmem:[%s4925_s2 + $0x8] sm:$0xff]  ;;  %v57_v9 = vrot.slane %v41_v4, 7  ;;  %v43_v16 = vld [vmem:[%s4924_s0 + $0x18] sm:$0xff]  ;;  %v59_v21 = vrot.slane %v42_v15, 7  ;;  %s3859_s22 = smov 48  }
   0x4   :  { %v47_v5 = vld [vmem:[%s4926_s1] sm:$0x1]  ;;  %v56_v6 = vrot.slane %v40_v3, 7  ;;  %3169 = vmatprep.subr.bf16.mxu0 %v3616_v1  ;;  %v2967_v11 = vld [vmem:[%s4926_s1 + $0x1] sm:$0x1]  ;;  %v35_v20 = vld [vmem:[%s4925_s2 + $0x10] sm:$0xff] }
   0x5   :  { %v3930_v10 = vld [vmem:[%s4924_s0 + $0x40] sm:$0xff]  ;;  %v1530_v19 = vsel %vm55_vm0, %v2967_v11, %v1510_v12  ;;  %v2962_v22 = vld [vmem:[%s4924_s0 + $0x48] sm:$0xff]  ;;  %v3957_v23 = vld [vmem:[%s4924_s0 + $0x50] sm:$0xff]  ;;  %v61_v27 = vrot.slane %v43_v16, 7  ;;  %v60_v30 = vsel %vm55_vm0, %v57_v9, %v59_v21  ;;  %s3857_s1 = smov 80   ;;  %s3860_s23 = smov 72  }
   0x6   :  { %v76_v13 = vsel %vm55_vm0, %v47_v5, %v56_v6  ;;  %v1511_v14 = vrot.slane %v3930_v10, 7  ;;  %v58_v17 = vsel %vm55_vm0, %v56_v6, %v57_v9  ;;  %v3959_v25 = vadd.f32 %v1530_v19, %v33_v2  ;;  %v36_v26 = vld [vmem:[%s4925_s2 + $0x18] sm:$0xff]  ;;  %v44_v28 = vld [vmem:[%s4924_s0 + $0x20] sm:$0xff]  ;;  %v45_v29 = vld [vmem:[%s4924_s0 + $0x28] sm:$0xff]  ;;  %s3861_s24 = smov 104   ;;  %s3863_s13 = smov 8  }
   0x7   :  { %v77_v18 = vadd.f32 %v76_v13, %v33_v2  ;;  %3170 = vmatpush3.bf16.msra.mxu0 %v3616_v1  ;;  %v78_v24 = vadd.f32 %v58_v17, %v34_v8  ;;  %v1513_v31 = vrot.slane %v2962_v22, 7  ;;  %v1515_v32 = vrot.slane %v3957_v23, 7  ;;  %v46_v33 = vld [vmem:[%s4924_s0 + $0x30] sm:$0x1]  ;;  %v37_v37 = vld [vmem:[%s4925_s2 + $0x20] sm:$0xff]  ;;  %v38_v42 = vld [vmem:[%s4925_s2 + $0x28] sm:$0xff] }
   0x8   :  { %v62_v35 = vsel %vm55_vm0, %v59_v21, %v61_v27  ;;  %v79_v36 = vadd.f32 %v60_v30, %v35_v20  ;;  %v63_v38 = vrot.slane %v44_v28, 7  ;;  %v65_v43 = vrot.slane %v45_v29, 7  ;;  %v39_v47 = vld [vmem:[%s4925_s2 + $0x30] sm:$0x3]  ;;  %v2964_v10 = vld [vmem:[%s4924_s0 + $0x58] sm:$0xff]  ;;  %v2965_v7 = vld [vmem:[%s4924_s0 + $0x60] sm:$0xff] }
   0x9   :  { %v84_v34 = vpack.c.bf16 %v78_v24, %v77_v18  ;;  %v80_v39 = vadd.f32 %v62_v35, %v36_v26  ;;  %v1514_v40 = vsel %vm55_vm0, %v1511_v14, %v1513_v31  ;;  %v1516_v41 = vsel %vm55_vm0, %v1513_v31, %v1515_v32  ;;  %v3848_v23 = vld [vmem:[%s4925_s2 + $0x30] sm:$0x3]  ;;  %s3864_s28 = smov 16   ;;  %s3865_s8 = smov 24  }
   0xa   :  { %v3989_v44 = vadd.f32 %v1514_v40, %v35_v20  ;;  %v3991_v45 = vadd.f32 %v1516_v41, %v36_v26  ;;  %v64_v46 = vsel %vm55_vm0, %v61_v27, %v63_v38  ;;  %v67_v48 = vrot.slane %v46_v33, 7 }
   0xb   :  { %3171 = vmatprep.mubr.msk.bf16.mxu0 %vm100_vm1, %v84_v34  ;;  %v85_v49 = vpack.c.bf16 %v80_v39, %v79_v36  ;;  %v66_v50 = vsel %vm55_vm0, %v63_v38, %v65_v43  ;;  %v81_v51 = vadd.f32 %v64_v46, %v37_v37  ;;  %vm1371_vm5 = vcmask 130048  }
   0xc   :  { %v1539_v52 = vpack.c.bf16 %v3991_v45, %v3989_v44  ;;  %v82_v53 = vadd.f32 %v66_v50, %v38_v42  ;;  %v68_v54 = vsel %vm55_vm0, %v65_v43, %v67_v48  ;;  %vm1379_vm6 = vcmask 195584  }
   0xd   :  { %3172 = vmatmul.mubr.msk.bf16.vlgmr.msra.gmra.mxu0 %vm100_vm1, %v85_v49  ;;  %v83_v55 = vadd.f32 %v68_v54, %v39_v47  ;;  %vm1491_vm7 = vcmask 254976  }
   0xe   :  { %v86_v56 = vpack.c.bf16 %v82_v53, %v81_v51 }
   0xf   :  { %v87_v57 = vpack.c.bf16 %v83_v55, %v83_v55 }
  0x10   :  { %3175 = vmatprep.mubr.msk.bf16.mxu0 %vm100_vm1, %v86_v56 }
  0x15   :  { %3176 = vmatmul.mubr.msk.bf16.gmra.mxu0 %vm100_vm1, %v87_v57 }
  0xcd   :  { %v3173_v58 = vpop.f32.mrf.mxu0 }
  0xcf   :  { %v147_v59 = vpop.f32.mrf.mxu0 }
  0xd1   :  { %v3174_v60 = vpop.f32.mrf.mxu0 }
  0xd2   :  { %v4004_v61 = vpack.c.bf16 %v3174_v60, %v3173_v58 }
  0xd3   :  { %v150_v62 = vpop.f32.mrf.mxu0 }
  0xd4   :  { %v4006_v63 = vpack.c.bf16 %v150_v62, %v147_v59  ;;  %187 = vrot.lane.b32.xlu1 %v4004_v61, %s3852_s16 }
  0xd5   :  { %v3177_v0 = vpop.f32.mrf.mxu0 }
  0xd6   :  { %v4010_v1 = vpack.c.bf16 %v3177_v0, %v3177_v0  ;;  %3187 = vmatprep.mubr.msk.bf16.mxu1 %vm193_vm2, %v4006_v63 }
  0xd7   :  { %v163_v2 = vpop.f32.mrf.mxu0 }
  0xd8   :  { %185 = vrot.lane.b32.xlu1 %v4006_v63, %s3852_s16  ;;  %191 = vrot.lane.b32.xlu0 %v4010_v1, %s3852_s16 }
  0xd9   :  { %v3178_v3 = vpop.f32.mrf.mxu0 }
  0xdb   :  { %v166_v4 = vpop.f32.mrf.mxu0 }
  0xdc   :  { %v4018_v5 = vpack.c.bf16 %v166_v4, %v163_v2 }
  0xde   :  { %189 = vrot.lane.b32.xlu0 %v4018_v5, %s3852_s16 }
 0x146   :  { %v188_v13 = vpop.permute.xlu1 %187 }
 0x147   :  { %v210_v15 = vsel %vm193_vm2, %v188_v13, 0 }
 0x14a   :  { %v192_v6 = vpop.permute.xlu0 %191  ;;  %v186_v16 = vpop.permute.xlu1 %185 }
 0x14b   :  { %3471 = vmatprep.subr.msk.bf16.mxu1 %vm193_vm2, %v192_v6  ;;  %v216_v8 = vsel %vm193_vm2, %v192_v6, 0  ;;  %v207_v17 = vsel %vm193_vm2, %v186_v16, 0 }
 0x14c   :  { %3180 = vmatpush3.bf16.xpose.msra.mxu1 %v216_v8 }
 0x150   :  { %v190_v9 = vpop.permute.xlu0 %189 }
 0x151   :  { %3472 = vmatprep.subr.msk.bf16.mxu1 %vm193_vm2, %v190_v9  ;;  %v213_v11 = vsel %vm193_vm2, %v190_v9, 0 }
 0x154   :  { %3182 = vmatpush3.bf16.xpose.msra.mxu1 %v213_v11 }
 0x155   :  { %3473 = vmatprep.subr.msk.bf16.mxu1 %vm193_vm2, %v188_v13 }
 0x15c   :  { %3184 = vmatpush3.bf16.xpose.msra.mxu1 %v210_v15 }
 0x15d   :  { %3474 = vmatprep.subr.msk.bf16.mxu1 %vm193_vm2, %v186_v16 }
 0x164   :  { %3186 = vmatpush3.bf16.xpose.msra.mxu1 %v207_v17 }
 0x16b   :  { %3188 = vmatmul.mubr.msk.bf16.vlgmr.msra.gmra.mxu1 %vm193_vm2, %v4004_v61 }
 0x16c   :  { %3191 = vmatprep.mubr.msk.bf16.mxu1 %vm193_vm2, %v4018_v5 }
 0x173   :  { %3192 = vmatmul.mubr.msk.bf16.gmra.mxu1 %vm193_vm2, %v4010_v1 }
 0x22b   :  { %v3189_v18 = vpop.f32.mrf.mxu1 }
 0x22c   :  { %v289_v19 = vsel %vm282_vm3, %v3189_v18, -inf }
 0x22d   :  { %290 = vmax.xlane.f32.xlu0 %v289_v19  ;;  %v252_v20 = vpop.f32.mrf.mxu1 }
 0x22e   :  { %v283_v22 = vsel %vm282_vm3, %v252_v20, -inf }
 0x22f   :  { %v3190_v21 = vpop.f32.mrf.mxu1 }
 0x230   :  { %v292_v28 = vsel %vm282_vm3, %v3190_v21, -inf }
 0x231   :  { %284 = vmax.xlane.f32.xlu0 %v283_v22  ;;  %v255_v24 = vpop.f32.mrf.mxu1 }
 0x232   :  { %v286_v26 = vsel %vm282_vm3, %v255_v24, -inf }
 0x233   :  { %287 = vmax.xlane.f32.xlu1 %v286_v26  ;;  %v4039_v27 = vpop.f32.mrf.mxu1 }
 0x234   :  { %v302_v30 = vsel %vm301_vm4, %v4039_v27, -inf }
 0x235   :  { %293 = vmax.xlane.f32.xlu0 %v292_v28  ;;  %v268_v29 = vpop.f32.mrf.mxu1 }
 0x236   :  { %v295_v34 = vsel %vm282_vm3, %v268_v29, -inf }
 0x237   :  { %303 = vmax.xlane.f32.xlu1 %v302_v30  ;;  %v3194_v31 = vpop.f32.mrf.mxu1 }
 0x239   :  { %v271_v33 = vpop.f32.mrf.mxu1 }
 0x23a   :  { %v298_v35 = vsel %vm282_vm3, %v271_v33, -inf }
 0x23b   :  { %296 = vmax.xlane.f32.xlu1 %v295_v34  ;;  %299 = vmax.xlane.f32.xlu0 %v298_v35 }
 0x24c   :  { %369 = vrot.lane.b32.xlu1 %v4018_v5, %s3853_s17 }
 0x250   :  { %367 = vrot.lane.b32.xlu1 %v4004_v61, %s3853_s17 }
 0x251   :  { %371 = vrot.lane.b32.xlu0 %v4010_v1, %s3853_s17 }
 0x254   :  { %469 = vrot.lane.b32.xlu1 %v4010_v1, %s3854_s18 }
 0x2b6   :  { %v291_v36 = vpop.xlane.xlu0 %290 }
 0x2b7   :  { %v307_v37 = vsub.f32 %v3189_v18, %v291_v36 }
 0x2b9   :  { %v316_v38 = vmul.f32 1.442695, %v307_v37 }
 0x2ba   :  { %v285_v39 = vpop.xlane.xlu0 %284 }
 0x2bb   :  { %3619 = vpow2.f32 %v316_v38  ;;  %v305_v40 = vsub.f32 %v252_v20, %v285_v39 }
 0x2bc   :  { %v288_v41 = vpop.xlane.xlu1 %287 }
 0x2bd   :  { %v312_v42 = vmul.f32 1.442695, %v305_v40  ;;  %v306_v43 = vsub.f32 %v255_v24, %v288_v41 }
 0x2be   :  { %v294_v46 = vpop.xlane.xlu0 %293 }
 0x2bf   :  { %3621 = vpow2.f32 %v312_v42  ;;  %v308_v47 = vsub.f32 %v3190_v21, %v294_v46  ;;  %v314_v49 = vmul.f32 1.442695, %v306_v43 }
 0x2c0   :  { %v304_v48 = vpop.xlane.xlu1 %303 }
 0x2c1   :  { %v318_v50 = vmul.f32 1.442695, %v308_v47  ;;  %v311_v6 = vsub.f32 %v4039_v27, %v304_v48 }
 0x2c3   :  { %3623 = vpow2.f32 %v318_v50  ;;  %v324_v8 = vmul.f32 1.442695, %v311_v6 }
 0x2c4   :  { %v297_v51 = vpop.xlane.xlu1 %296  ;;  %v300_v53 = vpop.xlane.xlu0 %299  ;;  %3625 = vpow2.f32 %v314_v49 }
 0x2c5   :  { %v309_v9 = vsub.f32 %v268_v29, %v297_v51  ;;  %3627 = vpow2.f32 %v324_v8  ;;  %v310_v13 = vsub.f32 %v271_v33, %v300_v53 }
 0x2c7   :  { %v320_v11 = vmul.f32 1.442695, %v309_v9  ;;  %v322_v15 = vmul.f32 1.442695, %v310_v13 }
 0x2c8   :  { %v4054_v54 = vpop.eup %3619  ;;  %v370_v55 = vpop.permute.xlu1 %369 }
 0x2c9   :  { %v372_v56 = vpop.permute.xlu0 %371  ;;  %v332_v57 = vsel %vm282_vm3, %v4054_v54, 0.0  ;;  %3629 = vpow2.f32 %v320_v11 }
 0x2ca   :  { %3475 = vmatprep.subr.msk.bf16.mxu0 %vm55_vm0, %v372_v56  ;;  %v389_v58 = vsel %vm55_vm0, %v372_v56, 0  ;;  %333 = vadd.xlane.f32.xlu0 %v332_v57  ;;  %3631 = vpow2.f32 %v322_v15 }
 0x2cb   :  { %3196 = vmatpush3.bf16.msra.mxu0 %v389_v58 }
 0x2cc   :  { %3197 = vmatprep.subr.bf16.mxu0 %v370_v55  ;;  %v3622_v59 = vpop.eup %3621  ;;  %v368_v62 = vpop.permute.xlu1 %367 }
 0x2cd   :  { %v326_v60 = vsel %vm282_vm3, %v3622_v59, 0.0 }
 0x2ce   :  { %327 = vadd.xlane.f32.xlu0 %v326_v60 }
 0x2cf   :  { %3198 = vmatpush3.bf16.msra.mxu0 %v370_v55 }
 0x2d0   :  { %3199 = vmatprep.subr.bf16.mxu0 %v368_v62  ;;  %v3624_v0 = vpop.eup %3623  ;;  %v470_v24 = vpop.permute.xlu1 %469 }
 0x2d1   :  { %v335_v2 = vsel %vm282_vm3, %v3624_v0, 0.0  ;;  %v3626_v3 = vpop.eup %3625  ;;  %v493_v41 = vsel %vm193_vm2, %v470_v24, 0 }
 0x2d2   :  { %336 = vadd.xlane.f32.xlu1 %v335_v2  ;;  %v329_v4 = vsel %vm282_vm3, %v3626_v3, 0.0  ;;  %v4068_v16 = vpop.eup %3627 }
 0x2d3   :  { %3200 = vmatpush3.bf16.msra.mxu0 %v368_v62  ;;  %v344_v17 = vsel %vm301_vm4, %v4068_v16, 0.0 }
 0x2d6   :  { %330 = vadd.xlane.f32.xlu1 %v329_v4  ;;  %v4072_v18 = vpop.eup %3629 }
 0x2d7   :  { %v338_v19 = vsel %vm282_vm3, %v4072_v18, 0.0  ;;  %v3632_v20 = vpop.eup %3631 }
 0x2d8   :  { %v341_v21 = vsel %vm282_vm3, %v3632_v20, 0.0 }
 0x2e4   :  { %365 = vrot.lane.b32.xlu0 %v4006_v63, %s3853_s17 }
 0x2e7   :  { %467 = vrot.lane.b32.xlu1 %v4018_v5, %s3854_s18 }
 0x303   :  { %345 = vadd.xlane.f32.xlu0 %v344_v17 }
 0x307   :  { %339 = vadd.xlane.f32.xlu0 %v338_v19 }
 0x30b   :  { %342 = vadd.xlane.f32.xlu1 %v341_v21 }
 0x31c   :  { %463 = vrot.lane.b32.xlu1 %v4006_v63, %s3854_s18 }
 0x31d   :  { %465 = vrot.lane.b32.xlu0 %v4004_v61, %s3854_s18 }
 0x320   :  { %457 = vrot.lane.b32.xlu1 %v4004_v61, %s3855_s19 }
 0x321   :  { %455 = vrot.lane.b32.xlu0 %v4006_v63, %s3855_s19 }
 0x324   :  { %461 = vrot.lane.b32.xlu1 %v4010_v1, %s3855_s19 }
 0x325   :  { %459 = vrot.lane.b32.xlu0 %v4018_v5, %s3855_s19 }
 0x353   :  { %v334_v22 = vpop.xlane.xlu0 %333 }
 0x357   :  { %v328_v26 = vpop.xlane.xlu0 %327 }
 0x35b   :  { %v337_v27 = vpop.xlane.xlu1 %336  ;;  %v366_v28 = vpop.permute.xlu0 %365 }
 0x35c   :  { %3201 = vmatprep.subr.bf16.mxu0 %v366_v28  ;;  %3633 = vrcp.f32 %v337_v27 }
 0x35d   :  { %3202 = vmatpush3.bf16.msra.mxu0 %v366_v28  ;;  %3635 = vrcp.f32 %v328_v26 }
 0x35e   :  { %3476 = vmatprep.subr.msk.bf16.mxu0 %vm193_vm2, %v470_v24  ;;  %3637 = vrcp.f32 %v334_v22 }
 0x35f   :  { %v331_v29 = vpop.xlane.xlu1 %330 }
 0x360   :  { %3639 = vrcp.f32 %v331_v29 }
 0x363   :  { %v468_v42 = vpop.permute.xlu1 %467 }
 0x364   :  { %v490_v43 = vsel %vm193_vm2, %v468_v42, 0 }
 0x369   :  { %v3634_v30 = vpop.eup %3633 }
 0x36a   :  { %v3636_v31 = vpop.eup %3635  ;;  %v354_v35 = vmul.f32 %v3634_v30, %v3624_v0 }
 0x36b   :  { %v3638_v33 = vpop.eup %3637  ;;  %v348_v36 = vmul.f32 %v3636_v31, %v3622_v59 }
 0x36c   :  { %v352_v38 = vmul.f32 %v3638_v33, %v4054_v54 }
 0x36d   :  { %v3640_v34 = vpop.eup %3639 }
 0x36e   :  { %v350_v37 = vmul.f32 %v3640_v34, %v3626_v3  ;;  %v362_v40 = vpack.c.bf16 %v354_v35, %v352_v38 }
 0x370   :  { %v361_v39 = vpack.c.bf16 %v350_v37, %v348_v36 }
 0x372   :  { %3203 = vmatprep.mubr.msk.bf16.mxu0 %vm282_vm3, %v361_v39 }
 0x373   :  { %3204 = vmatmul.mubr.msk.bf16.vlgmr.msra.gmra.mxu0 %vm282_vm3, %v362_v40 }
 0x374   :  { %3212 = vmatpush3.bf16.xpose.msra.mxu0 %v493_v41 }
 0x375   :  { %3477 = vmatprep.subr.msk.bf16.mxu0 %vm193_vm2, %v468_v42 }
 0x37c   :  { %3214 = vmatpush3.bf16.xpose.msra.mxu0 %v490_v43 }
 0x38c   :  { %v346_v46 = vpop.xlane.xlu0 %345 }
 0x38d   :  { %3641 = vrcp.f32 %v346_v46 }
 0x390   :  { %v340_v47 = vpop.xlane.xlu0 %339 }
 0x391   :  { %3643 = vrcp.f32 %v340_v47 }
 0x394   :  { %v343_v48 = vpop.xlane.xlu1 %342  ;;  %v466_v49 = vpop.permute.xlu0 %465 }
 0x395   :  { %3645 = vrcp.f32 %v343_v48  ;;  %3478 = vmatprep.subr.msk.bf16.mxu0 %vm193_vm2, %v466_v49  ;;  %v487_v50 = vsel %vm193_vm2, %v466_v49, 0 }
 0x396   :  { %3216 = vmatpush3.bf16.xpose.msra.mxu0 %v487_v50 }
 0x398   :  { %v464_v51 = vpop.permute.xlu1 %463  ;;  %v456_v0 = vpop.permute.xlu0 %455 }
 0x399   :  { %3479 = vmatprep.subr.msk.bf16.mxu0 %vm193_vm2, %v464_v51  ;;  %v484_v53 = vsel %vm193_vm2, %v464_v51, 0 }
 0x39a   :  { %v3642_v54 = vpop.eup %3641 }
 0x39b   :  { %v360_v57 = vmul.f32 %v3642_v54, %v4068_v16 }
 0x39c   :  { %v458_v2 = vpop.permute.xlu1 %457  ;;  %v460_v3 = vpop.permute.xlu0 %459 }
 0x39d   :  { %v364_v62 = vpack.c.bf16 %v360_v57, %v360_v57 }
 0x39e   :  { %3218 = vmatpush3.bf16.xpose.msra.mxu0 %v484_v53  ;;  %v3644_v55 = vpop.eup %3643 }
 0x39f   :  { %v356_v58 = vmul.f32 %v3644_v55, %v4072_v18 }
 0x3a0   :  { %v462_v4 = vpop.permute.xlu1 %461 }
 0x3a2   :  { %v3646_v56 = vpop.eup %3645 }
 0x3a3   :  { %v358_v59 = vmul.f32 %v3646_v56, %v3632_v20 }
 0x3a5   :  { %v363_v60 = vpack.c.bf16 %v358_v59, %v356_v58 }
 0x3a7   :  { %3207 = vmatprep.mubr.msk.bf16.mxu0 %vm282_vm3, %v363_v60 }
 0x3a8   :  { %3208 = vmatmul.mubr.msk.bf16.gmra.mxu0 %vm282_vm3, %v364_v62 }
 0x3a9   :  { %3219 = vmatprep.mubr.msk.bf16.mxu0 %vm193_vm2, %v456_v0 }
 0x3b0   :  { %3220 = vmatmul.mubr.msk.bf16.vlgmr.msra.gmra.mxu0 %vm193_vm2, %v458_v2 }
 0x3b1   :  { %3223 = vmatprep.mubr.msk.bf16.mxu0 %vm193_vm2, %v460_v3 }
 0x3b8   :  { %3224 = vmatmul.mubr.msk.bf16.gmra.mxu0 %vm193_vm2, %v462_v4 }
 0x433   :  { %v4108_v6 = vpop.f32.mrf.mxu0 }
 0x435   :  { %v4110_v8 = vpop.f32.mrf.mxu0 }
 0x437   :  { %v4112_v9 = vpop.f32.mrf.mxu0 }
 0x439   :  { %v4114_v11 = vpop.f32.mrf.mxu0 }
 0x468   :  { %v4116_v13 = vpop.f32.mrf.mxu0 }
 0x46a   :  { %v4118_v15 = vpop.f32.mrf.mxu0 }
 0x46c   :  { %v3210_v16 = vpop.f32.mrf.mxu0 }
 0x46e   :  { %v4120_v17 = vpop.f32.mrf.mxu0 }
 0x470   :  { %v3221_v18 = vpop.f32.mrf.mxu0 }
 0x471   :  { %v565_v19 = vsel %vm282_vm3, %v3221_v18, -inf }
 0x472   :  { %566 = vmax.xlane.f32.xlu0 %v565_v19  ;;  %v529_v20 = vpop.f32.mrf.mxu0 }
 0x473   :  { %v559_v22 = vsel %vm282_vm3, %v529_v20, -inf }
 0x474   :  { %v3222_v21 = vpop.f32.mrf.mxu0 }
 0x475   :  { %v568_v28 = vsel %vm282_vm3, %v3222_v21, -inf }
 0x476   :  { %560 = vmax.xlane.f32.xlu0 %v559_v22  ;;  %v532_v24 = vpop.f32.mrf.mxu0 }
 0x477   :  { %v562_v26 = vsel %vm282_vm3, %v532_v24, -inf }
 0x478   :  { %563 = vmax.xlane.f32.xlu1 %v562_v26  ;;  %v3225_v27 = vpop.f32.mrf.mxu0 }
 0x479   :  { %v577_v30 = vsel %vm301_vm4, %v3225_v27, -inf }
 0x47a   :  { %569 = vmax.xlane.f32.xlu0 %v568_v28  ;;  %v545_v29 = vpop.f32.mrf.mxu0 }
 0x47b   :  { %v571_v34 = vsel %vm282_vm3, %v545_v29, -inf }
 0x47c   :  { %578 = vmax.xlane.f32.xlu1 %v577_v30  ;;  %v3226_v31 = vpop.f32.mrf.mxu0 }
 0x47e   :  { %v548_v33 = vpop.f32.mrf.mxu0 }
 0x47f   :  { %v574_v35 = vsel %vm282_vm3, %v548_v33, -inf }
 0x480   :  { %572 = vmax.xlane.f32.xlu1 %v571_v34  ;;  %575 = vmax.xlane.f32.xlu0 %v574_v35 }
 0x491   :  { %644 = vrot.lane.b32.xlu1 %v4018_v5, %s3856_s20 }
 0x495   :  { %642 = vrot.lane.b32.xlu1 %v4004_v61, %s3856_s20 }
 0x496   :  { %646 = vrot.lane.b32.xlu0 %v4010_v1, %s3856_s20 }
 0x499   :  { %744 = vrot.lane.b32.xlu1 %v4010_v1, %s3857_s1 }
 0x4fb   :  { %v567_v36 = vpop.xlane.xlu0 %566 }
 0x4fc   :  { %v582_v37 = vsub.f32 %v3221_v18, %v567_v36 }
 0x4fe   :  { %v591_v38 = vmul.f32 1.442695, %v582_v37 }
 0x4ff   :  { %v561_v39 = vpop.xlane.xlu0 %560 }
 0x500   :  { %3647 = vpow2.f32 %v591_v38  ;;  %v580_v40 = vsub.f32 %v529_v20, %v561_v39 }
 0x501   :  { %v564_v41 = vpop.xlane.xlu1 %563 }
 0x502   :  { %v587_v42 = vmul.f32 1.442695, %v580_v40  ;;  %v581_v43 = vsub.f32 %v532_v24, %v564_v41 }
 0x503   :  { %v570_v46 = vpop.xlane.xlu0 %569 }
 0x504   :  { %3649 = vpow2.f32 %v587_v42  ;;  %v583_v47 = vsub.f32 %v3222_v21, %v570_v46  ;;  %v589_v49 = vmul.f32 1.442695, %v581_v43 }
 0x505   :  { %v579_v48 = vpop.xlane.xlu1 %578 }
 0x506   :  { %v593_v50 = vmul.f32 1.442695, %v583_v47  ;;  %v586_v16 = vsub.f32 %v3225_v27, %v579_v48 }
 0x508   :  { %3651 = vpow2.f32 %v593_v50  ;;  %v599_v18 = vmul.f32 1.442695, %v586_v16 }
 0x509   :  { %v573_v51 = vpop.xlane.xlu1 %572  ;;  %v576_v53 = vpop.xlane.xlu0 %575  ;;  %3653 = vpow2.f32 %v589_v49 }
 0x50a   :  { %v584_v19 = vsub.f32 %v545_v29, %v573_v51  ;;  %3655 = vpow2.f32 %v599_v18  ;;  %v585_v21 = vsub.f32 %v548_v33, %v576_v53 }
 0x50c   :  { %v595_v20 = vmul.f32 1.442695, %v584_v19  ;;  %v597_v22 = vmul.f32 1.442695, %v585_v21 }
 0x50d   :  { %v4137_v54 = vpop.eup %3647  ;;  %v645_v55 = vpop.permute.xlu1 %644 }
 0x50e   :  { %v647_v56 = vpop.permute.xlu0 %646  ;;  %v607_v57 = vsel %vm282_vm3, %v4137_v54, 0.0  ;;  %3657 = vpow2.f32 %v595_v20 }
 0x50f   :  { %3480 = vmatprep.subr.msk.bf16.mxu1 %vm55_vm0, %v647_v56  ;;  %v664_v58 = vsel %vm55_vm0, %v647_v56, 0  ;;  %608 = vadd.xlane.f32.xlu0 %v607_v57  ;;  %3659 = vpow2.f32 %v597_v22 }
 0x510   :  { %3228 = vmatpush3.bf16.msra.mxu1 %v664_v58 }
 0x511   :  { %3229 = vmatprep.subr.bf16.mxu1 %v645_v55  ;;  %v3650_v59 = vpop.eup %3649  ;;  %v643_v62 = vpop.permute.xlu1 %642 }
 0x512   :  { %v601_v60 = vsel %vm282_vm3, %v3650_v59, 0.0 }
 0x513   :  { %602 = vadd.xlane.f32.xlu0 %v601_v60 }
 0x514   :  { %3230 = vmatpush3.bf16.msra.mxu1 %v645_v55 }
 0x515   :  { %3231 = vmatprep.subr.bf16.mxu1 %v643_v62  ;;  %v3652_v0 = vpop.eup %3651  ;;  %v745_v33 = vpop.permute.xlu1 %744 }
 0x516   :  { %v610_v2 = vsel %vm282_vm3, %v3652_v0, 0.0  ;;  %v3654_v3 = vpop.eup %3653  ;;  %v768_v50 = vsel %vm193_vm2, %v745_v33, 0 }
 0x517   :  { %611 = vadd.xlane.f32.xlu1 %v610_v2  ;;  %v604_v4 = vsel %vm282_vm3, %v3654_v3, 0.0  ;;  %v4150_v24 = vpop.eup %3655 }
 0x518   :  { %3232 = vmatpush3.bf16.msra.mxu1 %v643_v62  ;;  %v619_v26 = vsel %vm301_vm4, %v4150_v24, 0.0 }
 0x51b   :  { %605 = vadd.xlane.f32.xlu1 %v604_v4  ;;  %v4154_v28 = vpop.eup %3657 }
 0x51c   :  { %v613_v30 = vsel %vm282_vm3, %v4154_v28, 0.0  ;;  %v3660_v27 = vpop.eup %3659 }
 0x51d   :  { %v616_v29 = vsel %vm282_vm3, %v3660_v27, 0.0 }
 0x529   :  { %640 = vrot.lane.b32.xlu0 %v4006_v63, %s3856_s20 }
 0x52c   :  { %742 = vrot.lane.b32.xlu1 %v4018_v5, %s3857_s1 }
 0x548   :  { %620 = vadd.xlane.f32.xlu0 %v619_v26 }
 0x54c   :  { %614 = vadd.xlane.f32.xlu0 %v613_v30 }
 0x550   :  { %617 = vadd.xlane.f32.xlu1 %v616_v29 }
 0x561   :  { %738 = vrot.lane.b32.xlu1 %v4006_v63, %s3857_s1 }
 0x562   :  { %740 = vrot.lane.b32.xlu0 %v4004_v61, %s3857_s1 }
 0x565   :  { %732 = vrot.lane.b32.xlu1 %v4004_v61, %s3858_s21 }
 0x566   :  { %730 = vrot.lane.b32.xlu0 %v4006_v63, %s3858_s21 }
 0x569   :  { %736 = vrot.lane.b32.xlu1 %v4010_v1, %s3858_s21 }
 0x56a   :  { %734 = vrot.lane.b32.xlu0 %v4018_v5, %s3858_s21 }
 0x598   :  { %v609_v31 = vpop.xlane.xlu0 %608 }
 0x59c   :  { %v603_v34 = vpop.xlane.xlu0 %602 }
 0x5a0   :  { %v612_v35 = vpop.xlane.xlu1 %611  ;;  %v641_v36 = vpop.permute.xlu0 %640 }
 0x5a1   :  { %3233 = vmatprep.subr.bf16.mxu1 %v641_v36  ;;  %3661 = vrcp.f32 %v612_v35 }
 0x5a2   :  { %3234 = vmatpush3.bf16.msra.mxu1 %v641_v36  ;;  %3663 = vrcp.f32 %v603_v34 }
 0x5a3   :  { %3481 = vmatprep.subr.msk.bf16.mxu1 %vm193_vm2, %v745_v33  ;;  %3665 = vrcp.f32 %v609_v31 }
 0x5a4   :  { %v606_v37 = vpop.xlane.xlu1 %605 }
 0x5a5   :  { %3667 = vrcp.f32 %v606_v37 }
 0x5a8   :  { %v743_v51 = vpop.permute.xlu1 %742 }
 0x5a9   :  { %v765_v53 = vsel %vm193_vm2, %v743_v51, 0 }
 0x5ae   :  { %v3662_v38 = vpop.eup %3661 }
 0x5af   :  { %v3664_v39 = vpop.eup %3663  ;;  %v629_v42 = vmul.f32 %v3662_v38, %v3652_v0 }
 0x5b0   :  { %v3666_v40 = vpop.eup %3665  ;;  %v623_v43 = vmul.f32 %v3664_v39, %v3650_v59 }
 0x5b1   :  { %v627_v47 = vmul.f32 %v3666_v40, %v4137_v54 }
 0x5b2   :  { %v3668_v41 = vpop.eup %3667 }
 0x5b3   :  { %v625_v46 = vmul.f32 %v3668_v41, %v3654_v3  ;;  %v637_v49 = vpack.c.bf16 %v629_v42, %v627_v47 }
 0x5b5   :  { %v636_v48 = vpack.c.bf16 %v625_v46, %v623_v43 }
 0x5b7   :  { %3235 = vmatprep.mubr.msk.bf16.mxu1 %vm282_vm3, %v636_v48 }
 0x5b8   :  { %3236 = vmatmul.mubr.msk.bf16.vlgmr.msra.gmra.mxu1 %vm282_vm3, %v637_v49 }
 0x5b9   :  { %3244 = vmatpush3.bf16.xpose.msra.mxu1 %v768_v50 }
 0x5ba   :  { %3482 = vmatprep.subr.msk.bf16.mxu1 %vm193_vm2, %v743_v51 }
 0x5c1   :  { %3246 = vmatpush3.bf16.xpose.msra.mxu1 %v765_v53 }
 0x5d1   :  { %v621_v55 = vpop.xlane.xlu0 %620 }
 0x5d2   :  { %3669 = vrcp.f32 %v621_v55 }
 0x5d5   :  { %v615_v56 = vpop.xlane.xlu0 %614 }
 0x5d6   :  { %3671 = vrcp.f32 %v615_v56 }
 0x5d9   :  { %v618_v54 = vpop.xlane.xlu1 %617  ;;  %v741_v57 = vpop.permute.xlu0 %740 }
 0x5da   :  { %3673 = vrcp.f32 %v618_v54  ;;  %3483 = vmatprep.subr.msk.bf16.mxu1 %vm193_vm2, %v741_v57  ;;  %v762_v58 = vsel %vm193_vm2, %v741_v57, 0 }
 0x5db   :  { %3248 = vmatpush3.bf16.xpose.msra.mxu1 %v762_v58 }
 0x5dd   :  { %v739_v59 = vpop.permute.xlu1 %738  ;;  %v731_v20 = vpop.permute.xlu0 %730 }
 0x5de   :  { %3484 = vmatprep.subr.msk.bf16.mxu1 %vm193_vm2, %v739_v59  ;;  %v759_v60 = vsel %vm193_vm2, %v739_v59, 0 }
 0x5df   :  { %v3670_v62 = vpop.eup %3669 }
 0x5e0   :  { %v635_v3 = vmul.f32 %v3670_v62, %v4150_v24 }
 0x5e1   :  { %v733_v21 = vpop.permute.xlu1 %732  ;;  %v735_v22 = vpop.permute.xlu0 %734 }
 0x5e2   :  { %v639_v19 = vpack.c.bf16 %v635_v3, %v635_v3 }
 0x5e3   :  { %3250 = vmatpush3.bf16.xpose.msra.mxu1 %v759_v60  ;;  %v3672_v0 = vpop.eup %3671 }
 0x5e4   :  { %v631_v4 = vmul.f32 %v3672_v0, %v4154_v28 }
 0x5e5   :  { %v737_v26 = vpop.permute.xlu1 %736 }
 0x5e7   :  { %v3674_v2 = vpop.eup %3673 }
 0x5e8   :  { %v633_v16 = vmul.f32 %v3674_v2, %v3660_v27 }
 0x5ea   :  { %v638_v18 = vpack.c.bf16 %v633_v16, %v631_v4 }
 0x5ec   :  { %3239 = vmatprep.mubr.msk.bf16.mxu1 %vm282_vm3, %v638_v18 }
 0x5ed   :  { %3240 = vmatmul.mubr.msk.bf16.gmra.mxu1 %vm282_vm3, %v639_v19 }
 0x5ee   :  { %3251 = vmatprep.mubr.msk.bf16.mxu1 %vm193_vm2, %v731_v20 }
 0x5f5   :  { %3252 = vmatmul.mubr.msk.bf16.vlgmr.msra.gmra.mxu1 %vm193_vm2, %v733_v21 }
 0x5f6   :  { %3255 = vmatprep.mubr.msk.bf16.mxu1 %vm193_vm2, %v735_v22 }
 0x5fd   :  { %3256 = vmatmul.mubr.msk.bf16.gmra.mxu1 %vm193_vm2, %v737_v26 }
 0x678   :  { %v4190_v24 = vpop.f32.mrf.mxu1 }
 0x67a   :  { %v4192_v28 = vpop.f32.mrf.mxu1 }
 0x67c   :  { %v4194_v30 = vpop.f32.mrf.mxu1 }
 0x67d   :  { %v3530_v27 = vpack.i.bf16 %v4194_v30, %v4190_v24 }
 0x67e   :  { %v4198_v29 = vpop.f32.mrf.mxu1 }
 0x67f   :  { %v3525_v31 = vpack.i.bf16 %v4198_v29, %v4192_v28 }
 0x6ad   :  { %v4202_v33 = vpop.f32.mrf.mxu1 }
 0x6af   :  { %v4204_v34 = vpop.f32.mrf.mxu1 }
 0x6b1   :  { %v3242_v35 = vpop.f32.mrf.mxu1 }
 0x6b3   :  { %v4206_v36 = vpop.f32.mrf.mxu1 }
 0x6b4   :  { %v3555_v37 = vpack.i.bf16 %v4206_v36, %v4204_v34 }
 0x6b5   :  { %v3253_v38 = vpop.f32.mrf.mxu1 }
 0x6b6   :  { %v840_v39 = vsel %vm282_vm3, %v3253_v38, -inf }
 0x6b7   :  { %841 = vmax.xlane.f32.xlu0 %v840_v39  ;;  %v804_v40 = vpop.f32.mrf.mxu1 }
 0x6b8   :  { %v834_v42 = vsel %vm282_vm3, %v804_v40, -inf }
 0x6b9   :  { %v3254_v41 = vpop.f32.mrf.mxu1 }
 0x6ba   :  { %v843_v48 = vsel %vm282_vm3, %v3254_v41, -inf }
 0x6bb   :  { %835 = vmax.xlane.f32.xlu0 %v834_v42  ;;  %v807_v43 = vpop.f32.mrf.mxu1 }
 0x6bc   :  { %v837_v46 = vsel %vm282_vm3, %v807_v43, -inf }
 0x6bd   :  { %838 = vmax.xlane.f32.xlu1 %v837_v46  ;;  %v3257_v47 = vpop.f32.mrf.mxu1 }
 0x6be   :  { %v852_v50 = vsel %vm301_vm4, %v3257_v47, -inf }
 0x6bf   :  { %844 = vmax.xlane.f32.xlu0 %v843_v48  ;;  %v820_v49 = vpop.f32.mrf.mxu1 }
 0x6c0   :  { %v846_v55 = vsel %vm282_vm3, %v820_v49, -inf }
 0x6c1   :  { %853 = vmax.xlane.f32.xlu1 %v852_v50  ;;  %v3258_v51 = vpop.f32.mrf.mxu1 }
 0x6c3   :  { %v823_v53 = vpop.f32.mrf.mxu1 }
 0x6c4   :  { %v849_v56 = vsel %vm282_vm3, %v823_v53, -inf }
 0x6c5   :  { %847 = vmax.xlane.f32.xlu1 %v846_v55  ;;  %850 = vmax.xlane.f32.xlu0 %v849_v56 }
 0x6d6   :  { %919 = vrot.lane.b32.xlu1 %v4018_v5, %s3859_s22 }
 0x6da   :  { %917 = vrot.lane.b32.xlu1 %v4004_v61, %s3859_s22 }
 0x6db   :  { %921 = vrot.lane.b32.xlu0 %v4010_v1, %s3859_s22 }
 0x6de   :  { %1019 = vrot.lane.b32.xlu1 %v4010_v1, %s3860_s23 }
 0x740   :  { %v842_v54 = vpop.xlane.xlu0 %841 }
 0x741   :  { %v857_v57 = vsub.f32 %v3253_v38, %v842_v54 }
 0x743   :  { %v866_v58 = vmul.f32 1.442695, %v857_v57 }
 0x744   :  { %v836_v59 = vpop.xlane.xlu0 %835 }
 0x745   :  { %3675 = vpow2.f32 %v866_v58  ;;  %v855_v60 = vsub.f32 %v804_v40, %v836_v59 }
 0x746   :  { %v839_v62 = vpop.xlane.xlu1 %838 }
 0x747   :  { %v862_v0 = vmul.f32 1.442695, %v855_v60  ;;  %v856_v2 = vsub.f32 %v807_v43, %v839_v62 }
 0x748   :  { %v845_v3 = vpop.xlane.xlu0 %844 }
 0x749   :  { %3677 = vpow2.f32 %v862_v0  ;;  %v858_v4 = vsub.f32 %v3254_v41, %v845_v3  ;;  %v864_v18 = vmul.f32 1.442695, %v856_v2 }
 0x74a   :  { %v854_v16 = vpop.xlane.xlu1 %853 }
 0x74b   :  { %v868_v19 = vmul.f32 1.442695, %v858_v4  ;;  %v861_v51 = vsub.f32 %v3257_v47, %v854_v16 }
 0x74d   :  { %3679 = vpow2.f32 %v868_v19  ;;  %v874_v55 = vmul.f32 1.442695, %v861_v51 }
 0x74e   :  { %v848_v20 = vpop.xlane.xlu1 %847  ;;  %v851_v21 = vpop.xlane.xlu0 %850  ;;  %3681 = vpow2.f32 %v864_v18 }
 0x74f   :  { %v859_v56 = vsub.f32 %v820_v49, %v848_v20  ;;  %3683 = vpow2.f32 %v874_v55  ;;  %v860_v57 = vsub.f32 %v823_v53, %v851_v21 }
 0x751   :  { %v870_v54 = vmul.f32 1.442695, %v859_v56  ;;  %v872_v58 = vmul.f32 1.442695, %v860_v57 }
 0x752   :  { %v4225_v22 = vpop.eup %3675  ;;  %v920_v26 = vpop.permute.xlu1 %919 }
 0x753   :  { %v922_v35 = vpop.permute.xlu0 %921  ;;  %v882_v38 = vsel %vm282_vm3, %v4225_v22, 0.0  ;;  %3685 = vpow2.f32 %v870_v54 }
 0x754   :  { %3485 = vmatprep.subr.msk.bf16.mxu0 %vm55_vm0, %v922_v35  ;;  %v939_v39 = vsel %vm55_vm0, %v922_v35, 0  ;;  %883 = vadd.xlane.f32.xlu0 %v882_v38  ;;  %3687 = vpow2.f32 %v872_v58 }
 0x755   :  { %3260 = vmatpush3.bf16.msra.mxu0 %v939_v39 }
 0x756   :  { %3261 = vmatprep.subr.bf16.mxu0 %v920_v26  ;;  %v3678_v40 = vpop.eup %3677  ;;  %v918_v42 = vpop.permute.xlu1 %917 }
 0x757   :  { %v876_v41 = vsel %vm282_vm3, %v3678_v40, 0.0 }
 0x758   :  { %877 = vadd.xlane.f32.xlu0 %v876_v41 }
 0x759   :  { %3262 = vmatpush3.bf16.msra.mxu0 %v920_v26 }
 0x75a   :  { %3263 = vmatprep.subr.bf16.mxu0 %v918_v42  ;;  %v3680_v43 = vpop.eup %3679  ;;  %v1020_v2 = vpop.permute.xlu1 %1019 }
 0x75b   :  { %v885_v46 = vsel %vm282_vm3, %v3680_v43, 0.0  ;;  %v3682_v48 = vpop.eup %3681 }
 0x75c   :  { %886 = vadd.xlane.f32.xlu1 %v885_v46  ;;  %v879_v50 = vsel %vm282_vm3, %v3682_v48, 0.0  ;;  %v4238_v59 = vpop.eup %3683 }
 0x75d   :  { %3264 = vmatpush3.bf16.msra.mxu0 %v918_v42  ;;  %v894_v60 = vsel %vm301_vm4, %v4238_v59, 0.0 }
 0x760   :  { %880 = vadd.xlane.f32.xlu1 %v879_v50  ;;  %v4242_v62 = vpop.eup %3685  ;;  %v1043_v50 = vsel %vm193_vm2, %v1020_v2, 0 }
 0x761   :  { %v888_v0 = vsel %vm282_vm3, %v4242_v62, 0.0  ;;  %v4246_v47 = vpop.eup %3687 }
 0x762   :  { %v891_v49 = vsel %vm282_vm3, %v4246_v47, 0.0 }
 0x76e   :  { %915 = vrot.lane.b32.xlu0 %v4006_v63, %s3859_s22 }
 0x771   :  { %1017 = vrot.lane.b32.xlu1 %v4018_v5, %s3860_s23 }
 0x78d   :  { %895 = vadd.xlane.f32.xlu0 %v894_v60  ;;  %v3843_v60 = vld [vmem:[%s4923_s3 + $0x8] sm:$0xff]  }
 0x791   :  { %889 = vadd.xlane.f32.xlu0 %v888_v0 }
 0x795   :  { %892 = vadd.xlane.f32.xlu1 %v891_v49 }
 0x7a6   :  { %1013 = vrot.lane.b32.xlu1 %v4006_v63, %s3860_s23 }
 0x7a7   :  { %1015 = vrot.lane.b32.xlu0 %v4004_v61, %s3860_s23 }
 0x7aa   :  { %1007 = vrot.lane.b32.xlu1 %v4004_v61, %s3861_s24 }
 0x7ab   :  { %1005 = vrot.lane.b32.xlu0 %v4006_v63, %s3861_s24 }
 0x7ae   :  { %1011 = vrot.lane.b32.xlu1 %v4010_v1, %s3861_s24 }
 0x7af   :  { %1009 = vrot.lane.b32.xlu0 %v4018_v5, %s3861_s24 }
 0x7dd   :  { %v884_v53 = vpop.xlane.xlu0 %883 }
 0x7e1   :  { %v878_v3 = vpop.xlane.xlu0 %877 }
 0x7e5   :  { %v887_v4 = vpop.xlane.xlu1 %886  ;;  %v916_v16 = vpop.permute.xlu0 %915 }
 0x7e6   :  { %3265 = vmatprep.subr.bf16.mxu0 %v916_v16  ;;  %3689 = vrcp.f32 %v887_v4 }
 0x7e7   :  { %3266 = vmatpush3.bf16.msra.mxu0 %v916_v16  ;;  %3691 = vrcp.f32 %v878_v3 }
 0x7e8   :  { %3486 = vmatprep.subr.msk.bf16.mxu0 %vm193_vm2, %v1020_v2  ;;  %3693 = vrcp.f32 %v884_v53 }
 0x7e9   :  { %v881_v18 = vpop.xlane.xlu1 %880 }
 0x7ea   :  { %3695 = vrcp.f32 %v881_v18 }
 0x7ed   :  { %v1018_v51 = vpop.permute.xlu1 %1017 }
 0x7ee   :  { %v1040_v55 = vsel %vm193_vm2, %v1018_v51, 0 }
 0x7f3   :  { %v3690_v19 = vpop.eup %3689 }
 0x7f4   :  { %v3692_v20 = vpop.eup %3691  ;;  %v904_v35 = vmul.f32 %v3690_v19, %v3680_v43 }
 0x7f5   :  { %v3694_v21 = vpop.eup %3693  ;;  %v898_v38 = vmul.f32 %v3692_v20, %v3678_v40 }
 0x7f6   :  { %v902_v41 = vmul.f32 %v3694_v21, %v4225_v22 }
 0x7f7   :  { %v3696_v26 = vpop.eup %3695 }
 0x7f8   :  { %v900_v39 = vmul.f32 %v3696_v26, %v3682_v48  ;;  %v912_v46 = vpack.c.bf16 %v904_v35, %v902_v41 }
 0x7fa   :  { %v911_v42 = vpack.c.bf16 %v900_v39, %v898_v38 }
 0x7fc   :  { %3267 = vmatprep.mubr.msk.bf16.mxu0 %vm282_vm3, %v911_v42 }
 0x7fd   :  { %3268 = vmatmul.mubr.msk.bf16.vlgmr.msra.gmra.mxu0 %vm282_vm3, %v912_v46 }
 0x7fe   :  { %3276 = vmatpush3.bf16.xpose.msra.mxu0 %v1043_v50 }
 0x7ff   :  { %3487 = vmatprep.subr.msk.bf16.mxu0 %vm193_vm2, %v1018_v51 }
 0x806   :  { %3278 = vmatpush3.bf16.xpose.msra.mxu0 %v1040_v55 }
 0x816   :  { %v896_v43 = vpop.xlane.xlu0 %895 }
 0x817   :  { %3697 = vrcp.f32 %v896_v43 }
 0x81a   :  { %v890_v40 = vpop.xlane.xlu0 %889 }
 0x81b   :  { %3699 = vrcp.f32 %v890_v40 }
 0x81e   :  { %v893_v22 = vpop.xlane.xlu1 %892  ;;  %v1016_v48 = vpop.permute.xlu0 %1015 }
 0x81f   :  { %3701 = vrcp.f32 %v893_v22  ;;  %3488 = vmatprep.subr.msk.bf16.mxu0 %vm193_vm2, %v1016_v48  ;;  %v1037_v56 = vsel %vm193_vm2, %v1016_v48, 0 }
 0x820   :  { %3280 = vmatpush3.bf16.xpose.msra.mxu0 %v1037_v56 }
 0x822   :  { %v1014_v54 = vpop.permute.xlu1 %1013  ;;  %v1006_v18 = vpop.permute.xlu0 %1005 }
 0x823   :  { %3489 = vmatprep.subr.msk.bf16.mxu0 %vm193_vm2, %v1014_v54  ;;  %v1034_v57 = vsel %vm193_vm2, %v1014_v54, 0 }
 0x824   :  { %v3698_v58 = vpop.eup %3697 }
 0x825   :  { %v910_v53 = vmul.f32 %v3698_v58, %v4238_v59  ;;  %v3844_v59 = vld [vmem:[%s4923_s3] sm:$0xff]   ;;  %s3862_s3 = smov 40  }
 0x826   :  { %v1008_v19 = vpop.permute.xlu1 %1007  ;;  %v1010_v20 = vpop.permute.xlu0 %1009 }
 0x827   :  { %v914_v16 = vpack.c.bf16 %v910_v53, %v910_v53 }
 0x828   :  { %3282 = vmatpush3.bf16.xpose.msra.mxu0 %v1034_v57  ;;  %v3700_v0 = vpop.eup %3699 }
 0x829   :  { %3319 = vmatprep.subr.bf16.mxu0 %v3843_v60  ;;  %v906_v2 = vmul.f32 %v3700_v0, %v4242_v62 }
 0x82a   :  { %v1012_v62 = vpop.permute.xlu1 %1011 }
 0x82c   :  { %v3702_v49 = vpop.eup %3701 }
 0x82d   :  { %v908_v3 = vmul.f32 %v3702_v49, %v4246_v47 }
 0x82f   :  { %v913_v4 = vpack.c.bf16 %v908_v3, %v906_v2 }
 0x831   :  { %3271 = vmatprep.mubr.msk.bf16.mxu0 %vm282_vm3, %v913_v4 }
 0x832   :  { %3272 = vmatmul.mubr.msk.bf16.gmra.mxu0 %vm282_vm3, %v914_v16 }
 0x833   :  { %3283 = vmatprep.mubr.msk.bf16.mxu0 %vm193_vm2, %v1006_v18 }
 0x83a   :  { %3284 = vmatmul.mubr.msk.bf16.vlgmr.msra.gmra.mxu0 %vm193_vm2, %v1008_v19 }
 0x83b   :  { %3287 = vmatprep.mubr.msk.bf16.mxu0 %vm193_vm2, %v1010_v20  ;;  %3320 = vmatpush3.bf16.msra.mxu0 %v3843_v60 }
 0x83c   :  { %3321 = vmatprep.subr.bf16.mxu0 %v3844_v59 }
 0x83f   :  { %3322 = vmatpush3.bf16.msra.mxu0 %v3844_v59 }
 0x842   :  { %3288 = vmatmul.mubr.msk.bf16.gmra.mxu0 %vm193_vm2, %v1012_v62 }
 0x8bd   :  { %v4288_v47 = vpop.f32.mrf.mxu0 }
 0x8bf   :  { %v4290_v21 = vpop.f32.mrf.mxu0 }
 0x8c1   :  { %v4292_v26 = vpop.f32.mrf.mxu0 }
 0x8c2   :  { %v3540_v35 = vpack.i.bf16 %v4292_v26, %v4288_v47 }
 0x8c3   :  { %v4296_v38 = vpop.f32.mrf.mxu0 }
 0x8c4   :  { %v3535_v39 = vpack.i.bf16 %v4296_v38, %v4290_v21 }
 0x8f2   :  { %v4300_v41 = vpop.f32.mrf.mxu0 }
 0x8f4   :  { %v4302_v42 = vpop.f32.mrf.mxu0 }
 0x8f6   :  { %v3274_v46 = vpop.f32.mrf.mxu0 }
 0x8f8   :  { %v4304_v50 = vpop.f32.mrf.mxu0 }
 0x8f9   :  { %v3560_v51 = vpack.i.bf16 %v4304_v50, %v4302_v42 }
 0x8fa   :  { %v3285_v55 = vpop.f32.mrf.mxu0 }
 0x8fb   :  { %v1115_v56 = vsel %vm282_vm3, %v3285_v55, -inf }
 0x8fc   :  { %v1079_v43 = vpop.f32.mrf.mxu0 }
 0x8fd   :  { %v1109_v40 = vsel %vm282_vm3, %v1079_v43, -inf }
 0x8fe   :  { %1110 = vmax.xlane.f32.xlu0 %v1109_v40  ;;  %v3286_v22 = vpop.f32.mrf.mxu0 }
 0x8ff   :  { %v1118_v60 = vsel %vm282_vm3, %v3286_v22, -inf }
 0x900   :  { %v1082_v48 = vpop.f32.mrf.mxu0 }
 0x901   :  { %v1112_v54 = vsel %vm282_vm3, %v1082_v48, -inf }
 0x902   :  { %1116 = vmax.xlane.f32.xlu0 %v1115_v56  ;;  %1113 = vmax.xlane.f32.xlu1 %v1112_v54  ;;  %v3289_v57 = vpop.f32.mrf.mxu0 }
 0x903   :  { %v1127_v0 = vsel %vm301_vm4, %v3289_v57, -inf }
 0x904   :  { %v1095_v58 = vpop.f32.mrf.mxu0 }
 0x905   :  { %v1121_v2 = vsel %vm282_vm3, %v1095_v58, -inf }
 0x906   :  { %1119 = vmax.xlane.f32.xlu0 %v1118_v60  ;;  %1128 = vmax.xlane.f32.xlu1 %v1127_v0  ;;  %v3290_v49 = vpop.f32.mrf.mxu0 }
 0x908   :  { %v1098_v53 = vpop.f32.mrf.mxu0 }
 0x909   :  { %v1124_v3 = vsel %vm282_vm3, %v1098_v53, -inf }
 0x90a   :  { %1122 = vmax.xlane.f32.xlu1 %v1121_v2  ;;  %1125 = vmax.xlane.f32.xlu0 %v1124_v3 }
 0x91b   :  { %1194 = vrot.lane.b32.xlu1 %v4018_v5, %s3862_s3 }
 0x920   :  { %1196 = vrot.lane.b32.xlu0 %v4010_v1, %s3862_s3 }
 0x987   :  { %v1111_v4 = vpop.xlane.xlu0 %1110 }
 0x988   :  { %v1130_v16 = vsub.f32 %v1079_v43, %v1111_v4 }
 0x98a   :  { %v1137_v62 = vmul.f32 1.442695, %v1130_v16 }
 0x98b   :  { %v1114_v18 = vpop.xlane.xlu1 %1113  ;;  %v1117_v19 = vpop.xlane.xlu0 %1116 }
 0x98c   :  { %v1132_v20 = vsub.f32 %v3285_v55, %v1117_v19  ;;  %v1131_v46 = vsub.f32 %v1082_v48, %v1114_v18 }
 0x98e   :  { %v1141_v59 = vmul.f32 1.442695, %v1132_v20  ;;  %v1139_v0 = vmul.f32 1.442695, %v1131_v46 }
 0x98f   :  { %v1129_v40 = vpop.xlane.xlu1 %1128  ;;  %v1120_v56 = vpop.xlane.xlu0 %1119 }
 0x990   :  { %v1133_v54 = vsub.f32 %v3286_v22, %v1120_v56  ;;  %3703 = vpow2.f32 %v1141_v59  ;;  %v1136_v43 = vsub.f32 %v3289_v57, %v1129_v40 }
 0x991   :  { %3705 = vpow2.f32 %v1137_v62 }
 0x992   :  { %v1143_v60 = vmul.f32 1.442695, %v1133_v54  ;;  %v1149_v16 = vmul.f32 1.442695, %v1136_v43 }
 0x993   :  { %v1123_v49 = vpop.xlane.xlu1 %1122  ;;  %v1126_v5 = vpop.xlane.xlu0 %1125 }
 0x994   :  { %v1134_v2 = vsub.f32 %v1095_v58, %v1123_v49  ;;  %v1135_v3 = vsub.f32 %v1098_v53, %v1126_v5  ;;  %3707 = vpow2.f32 %v1143_v60  ;;  %v1512_v49 = vsel %vm55_vm0, %v1510_v12, %v1511_v14  ;;  %v3845_v5 = vld [vmem:[%s4925_s2 + $0x8] sm:$0xff] }
 0x995   :  { %3709 = vpow2.f32 %v1139_v0  ;;  %v1517_v12 = vrot.slane %v2964_v10, 7  ;;  %v1519_v14 = vrot.slane %v2965_v7, 7 }
 0x996   :  { %v1147_v1 = vmul.f32 1.442695, %v1135_v3  ;;  %v1145_v4 = vmul.f32 1.442695, %v1134_v2  ;;  %v1532_v2 = vadd.f32 %v3845_v5, %v1512_v49 }
 0x997   :  { %v1197_v55 = vpop.permute.xlu0 %1196  ;;  %v1195_v22 = vpop.permute.xlu1 %1194  ;;  %v1518_v44 = vsel %vm55_vm0, %v1515_v32, %v1517_v12  ;;  %v1520_v45 = vsel %vm55_vm0, %v1517_v12, %v1519_v14 }
 0x998   :  { %3490 = vmatprep.subr.msk.bf16.mxu1 %vm55_vm0, %v1197_v55  ;;  %v1214_v48 = vsel %vm55_vm0, %v1197_v55, 0  ;;  %3711 = vpow2.f32 %v1147_v1  ;;  %v1538_v3 = vpack.c.bf16 %v1532_v2, %v3959_v25  ;;  %v2966_v25 = vld [vmem:[%s4924_s0 + $0x68] sm:$0x1] }
 0x999   :  { %3292 = vmatpush3.bf16.msra.mxu1 %v1214_v48  ;;  %3713 = vpow2.f32 %v1145_v4 }
 0x99a   :  { %3293 = vmatprep.subr.bf16.mxu1 %v1195_v22  ;;  %3715 = vpow2.f32 %v1149_v16  ;;  %3323 = vmatprep.mubr.msk.bf16.mxu0 %vm100_vm1, %v1538_v3 }
 0x99b   :  { %3324 = vmatmul.mubr.msk.bf16.vlgmr.msra.gmra.mxu0 %vm100_vm1, %v1539_v52  ;;  %v3846_v52 = vld [vmem:[%s4925_s2 + $0x20] sm:$0xff] }
 0x99c   :  { %v1535_v1 = vadd.f32 %v3846_v52, %v1518_v44 }
 0x99d   :  { %3294 = vmatpush3.bf16.msra.mxu1 %v1195_v22  ;;  %v4321_v18 = vpop.eup %3703 }
 0x99e   :  { %v1157_v58 = vsel %vm282_vm3, %v4321_v18, 0.0  ;;  %v4325_v57 = vpop.eup %3705 }
 0x99f   :  { %1158 = vadd.xlane.f32.xlu0 %v1157_v58  ;;  %v1151_v19 = vsel %vm282_vm3, %v4325_v57, 0.0 }
 0x9a1   :  { %v4327_v53 = vpop.eup %3707 }
 0x9a2   :  { %v1160_v20 = vsel %vm282_vm3, %v4327_v53, 0.0  ;;  %v4333_v59 = vpop.eup %3709 }
 0x9a3   :  { %1152 = vadd.xlane.f32.xlu0 %v1151_v19  ;;  %1161 = vadd.xlane.f32.xlu1 %v1160_v20  ;;  %v1154_v46 = vsel %vm282_vm3, %v4333_v59, 0.0 }
 0x9a5   :  { %v4335_v62 = vpop.eup %3711 }
 0x9a6   :  { %v1166_v40 = vsel %vm282_vm3, %v4335_v62, 0.0  ;;  %v4341_v56 = vpop.eup %3713 }
 0x9a7   :  { %1155 = vadd.xlane.f32.xlu1 %v1154_v46  ;;  %1167 = vadd.xlane.f32.xlu0 %v1166_v40  ;;  %v1163_v54 = vsel %vm282_vm3, %v4341_v56, 0.0  ;;  %v4345_v60 = vpop.eup %3715 }
 0x9a8   :  { %v1169_v0 = vsel %vm301_vm4, %v4345_v60, 0.0 }
 0x9ab   :  { %1164 = vadd.xlane.f32.xlu1 %v1163_v54 }
 0x9af   :  { %1170 = vadd.xlane.f32.xlu1 %v1169_v0 }
 0x9bd   :  { %1192 = vrot.lane.b32.xlu0 %v4004_v61, %s3862_s3  ;;  %v1521_v61 = vrot.slane %v2966_v25, 7 }
 0x9bf   :  { %v1522_v4 = vsel %vm55_vm0, %v1519_v14, %v1521_v61  ;;  %v3617_v61 = vld [vmem:[%s4927_s4 + $0x8] sm:$0xff]  }
 0x9c0   :  { %1190 = vrot.lane.b32.xlu1 %v4006_v63, %s3862_s3  ;;  %v3847_v63 = vld [vmem:[%s4925_s2 + $0x28] sm:$0xff]  ;;  %v1537_v28 = vadd.f32 %v3848_v23, %v1522_v4 }
 0x9c1   :  { %3526 = vrot.lane.b32.xlu0 %v3525_v31, %s3863_s13  ;;  %v1536_v43 = vadd.f32 %v3847_v63, %v1520_v45 }
 0x9c2   :  { %v1541_v29 = vpack.c.bf16 %v1537_v28, %v1537_v28 }
 0x9c3   :  { %v1540_v32 = vpack.c.bf16 %v1536_v43, %v1535_v1 }
 0x9c4   :  { %3531 = vrot.lane.b32.xlu1 %v3530_v27, %s3863_s13 }
 0x9c5   :  { %3536 = vrot.lane.b32.xlu0 %v3535_v39, %s3864_s28  ;;  %3327 = vmatprep.mubr.msk.bf16.mxu0 %vm100_vm1, %v1540_v32 }
 0x9c6   :  { %3328 = vmatmul.mubr.msk.bf16.gmra.mxu0 %vm100_vm1, %v1541_v29 }
 0x9c8   :  { %3541 = vrot.lane.b32.xlu1 %v3540_v35, %s3864_s28 }
 0xa28   :  { %v1159_v31 = vpop.xlane.xlu0 %1158 }
 0xa2c   :  { %v1162_v24 = vpop.xlane.xlu1 %1161  ;;  %v1153_v30 = vpop.xlane.xlu0 %1152 }
 0xa2d   :  { %3717 = vrcp.f32 %v1162_v24 }
 0xa2e   :  { %3719 = vrcp.f32 %v1153_v30 }
 0xa2f   :  { %3721 = vrcp.f32 %v1159_v31 }
 0xa30   :  { %v1156_v27 = vpop.xlane.xlu1 %1155  ;;  %v1168_v55 = vpop.xlane.xlu0 %1167 }
 0xa31   :  { %3723 = vrcp.f32 %v1156_v27 }
 0xa32   :  { %3725 = vrcp.f32 %v1168_v55 }
 0xa34   :  { %v1165_v21 = vpop.xlane.xlu1 %1164  ;;  %v1193_v38 = vpop.permute.xlu0 %1192 }
 0xa35   :  { %3727 = vrcp.f32 %v1165_v21  ;;  %3295 = vmatprep.subr.bf16.mxu1 %v1193_v38 }
 0xa36   :  { %3296 = vmatpush3.bf16.msra.mxu1 %v1193_v38 }
 0xa38   :  { %v1171_v39 = vpop.xlane.xlu1 %1170  ;;  %v3527_v36 = vpop.permute.xlu0 %3526 }
 0xa39   :  { %3729 = vrcp.f32 %v1171_v39  ;;  %v3529_v42 = vunpack.i.h.bf16 %v3527_v36  ;;  %v3528_v50 = vunpack.i.l.bf16 %v3527_v36 }
 0xa3a   :  { %v3718_v48 = vpop.eup %3717 }
 0xa3b   :  { %v3720_v47 = vpop.eup %3719  ;;  %v1179_v16 = vmul.f32 %v3718_v48, %v4327_v53 }
 0xa3c   :  { %v1191_v26 = vpop.permute.xlu1 %1190  ;;  %v3722_v35 = vpop.eup %3721  ;;  %v1173_v58 = vmul.f32 %v3720_v47, %v4325_v57 }
 0xa3d   :  { %3297 = vmatprep.subr.bf16.mxu1 %v1191_v26  ;;  %v1177_v46 = vmul.f32 %v3722_v35, %v4321_v18  ;;  %v3537_v27 = vpop.permute.xlu0 %3536  ;;  %v1364_v35 = vsel %vm193_vm2, %v4110_v8, %v3528_v50 }
 0xa3e   :  { %v3724_v22 = vpop.eup %3723  ;;  %3298 = vmatpush3.bf16.msra.mxu1 %v1191_v26  ;;  %v3539_v38 = vunpack.i.h.bf16 %v3537_v27  ;;  %v3538_v39 = vunpack.i.l.bf16 %v3537_v27  ;;  %v1365_v26 = vsel %vm193_vm2, %v4114_v11, %v3529_v42  ;;  %v2953_v27 = vld [vmem:[%s4928_s5] ss:$0 sm:$0xff] }
 0xa3f   :  { %v1175_v19 = vmul.f32 %v3724_v22, %v4333_v59  ;;  %v3726_v20 = vpop.eup %3725  ;;  %v1187_v0 = vpack.c.bf16 %v1179_v16, %v1177_v46  ;;  %3307 = vmatprep.subr.bf16.mxu1 %v3617_v61 }
 0xa40   :  { %v1183_v5 = vmul.f32 %v3726_v20, %v4335_v62  ;;  %v3532_v34 = vpop.permute.xlu1 %3531  ;;  %v1373_v11 = vsel %vm1371_vm5, %v1365_v26, %v3539_v38 }
 0xa41   :  { %v1186_v40 = vpack.c.bf16 %v1175_v19, %v1173_v58  ;;  %v3533_v55 = vunpack.i.l.bf16 %v3532_v34 }
 0xa42   :  { %v3728_v54 = vpop.eup %3727 }
 0xa43   :  { %3299 = vmatprep.mubr.msk.bf16.mxu1 %vm282_vm3, %v1186_v40  ;;  %v1181_v49 = vmul.f32 %v3728_v54, %v4341_v56  ;;  %v1366_v16 = vsel %vm193_vm2, %v4108_v6, %v3533_v55  ;;  %v1372_v54 = vsel %vm1371_vm5, %v1364_v35, %v3538_v39 }
 0xa44   :  { %3300 = vmatmul.mubr.msk.bf16.vlgmr.msra.gmra.mxu1 %vm282_vm3, %v1187_v0 }
 0xa45   :  { %v1188_v53 = vpack.c.bf16 %v1183_v5, %v1181_v49  ;;  %3308 = vmatpush3.bf16.msra.mxu1 %v3617_v61 }
 0xa46   :  { %v3730_v2 = vpop.eup %3729 }
 0xa47   :  { %3303 = vmatprep.mubr.msk.bf16.mxu1 %vm282_vm3, %v1188_v53  ;;  %v1185_v57 = vmul.f32 %v3730_v2, %v4345_v60  ;;  %v3618_v60 = vld [vmem:[%s4927_s4] sm:$0xff]  }
 0xa48   :  { %3309 = vmatprep.subr.bf16.mxu1 %v3618_v60 }
 0xa49   :  { %v1189_v59 = vpack.c.bf16 %v1185_v57, %v1185_v57  ;;  %3310 = vmatpush3.bf16.msra.mxu1 %v3618_v60 }
 0xa4c   :  { %3304 = vmatmul.mubr.msk.bf16.gmra.mxu1 %vm282_vm3, %v1189_v59 }
 0xa5b   :  { %v3325_v18 = vpop.f32.mrf.mxu0 }
 0xa5d   :  { %v1588_v3 = vpop.f32.mrf.mxu0 }
 0xa5f   :  { %v3326_v10 = vpop.f32.mrf.mxu0 }
 0xa60   :  { %v4419_v7 = vpack.c.bf16 %v3326_v10, %v3325_v18 }
 0xa61   :  { %v1591_v12 = vpop.f32.mrf.mxu0 }
 0xa62   :  { %v4421_v56 = vpack.c.bf16 %v1591_v12, %v1588_v3 }
 0xa86   :  { %v3329_v62 = vpop.f32.mrf.mxu0 }
 0xa87   :  { %v4432_v32 = vpack.c.bf16 %v3329_v62, %v3329_v62 }
 0xa88   :  { %v1604_v14 = vpop.f32.mrf.mxu0 }
 0xa8a   :  { %v3330_v25 = vpop.f32.mrf.mxu0 }
 0xa8c   :  { %v1607_v1 = vpop.f32.mrf.mxu0 }
 0xa8d   :  { %v4430_v23 = vpack.c.bf16 %v1607_v1, %v1604_v14 }
 0xb04   :  { %v3301_v44 = vpop.f32.mrf.mxu1 }
 0xb06   :  { %v1250_v45 = vpop.f32.mrf.mxu1 }
 0xb08   :  { %v3302_v52 = vpop.f32.mrf.mxu1 }
 0xb09   :  { %v3545_v63 = vpack.i.bf16 %v3302_v52, %v3301_v44 }
 0xb0a   :  { %v1253_v43 = vpop.f32.mrf.mxu1 }
 0xb0b   :  { %v3550_v4 = vpack.i.bf16 %v1253_v43, %v1250_v45  ;;  %3546 = vrot.lane.b32.xlu1 %v3545_v63, %s3865_s8 }
 0xb0c   :  { %v3305_v28 = vpop.f32.mrf.mxu1 }
 0xb0d   :  { %3551 = vrot.lane.b32.xlu0 %v3550_v4, %s3865_s8 }
 0xb0e   :  { %v1266_v29 = vpop.f32.mrf.mxu1 }
 0xb0f   :  { %1630 = vrot.lane.b32.xlu1 %v4430_v23, %s3852_s16 }
 0xb10   :  { %v3306_v31 = vpop.f32.mrf.mxu1 }
 0xb11   :  { %1632 = vrot.lane.b32.xlu0 %v4432_v32, %s3852_s16 }
 0xb12   :  { %v1269_v24 = vpop.f32.mrf.mxu1 }
 0xb13   :  { %3556 = vrot.lane.b32.xlu1 %v3555_v37, %s3863_s13  ;;  %v3565_v30 = vpack.i.bf16 %v1269_v24, %v1266_v29  ;;  %v3542_v37 = vpop.permute.xlu1 %3541 }
 0xb14   :  { %v3544_v21 = vunpack.i.h.bf16 %v3542_v37 }
 0xb15   :  { %1628 = vrot.lane.b32.xlu0 %v4419_v7, %s3852_s16 }
 0xb17   :  { %3561 = vrot.lane.b32.xlu1 %v3560_v51, %s3864_s28  ;;  %v3534_v51 = vunpack.i.h.bf16 %v3532_v34 }
 0xb19   :  { %1299 = vrot.lane.b32.xlu0 %v4202_v33, %s3863_s13  ;;  %v3543_v33 = vunpack.i.l.bf16 %v3542_v37  ;;  %v1367_v22 = vsel %vm193_vm2, %v4112_v9, %v3534_v51 }
 0xb1a   :  { %v1375_v20 = vsel %vm1371_vm5, %v1367_v22, %v3544_v21 }
 0xb1b   :  { %3566 = vrot.lane.b32.xlu1 %v3565_v30, %s3865_s8  ;;  %v1374_v19 = vsel %vm1371_vm5, %v1366_v16, %v3543_v33 }
 0xb1d   :  { %1327 = vrot.lane.b32.xlu0 %v4300_v41, %s3864_s28 }
 0xb1f   :  { %1626 = vrot.lane.b32.xlu1 %v4421_v56, %s3852_s16 }
 0xb21   :  { %1355 = vrot.lane.b32.xlu0 %v3305_v28, %s3865_s8 }
 0xb7d   :  { %v3547_v48 = vpop.permute.xlu1 %3546 }
 0xb7e   :  { %v3549_v41 = vunpack.i.h.bf16 %v3547_v48  ;;  %v3548_v47 = vunpack.i.l.bf16 %v3547_v48 }
 0xb7f   :  { %v3552_v58 = vpop.permute.xlu0 %3551 }
 0xb80   :  { %v3554_v46 = vunpack.i.h.bf16 %v3552_v58  ;;  %v3553_v40 = vunpack.i.l.bf16 %v3552_v58  ;;  %v1383_v0 = vsel %vm1379_vm6, %v1375_v20, %v3549_v41  ;;  %v1382_v8 = vsel %vm1379_vm6, %v1374_v19, %v3548_v47 }
 0xb81   :  { %v1631_v49 = vpop.permute.xlu1 %1630  ;;  %v1388_v2 = vpack.c.bf16 %v1383_v0, %v1382_v8 }
 0xb82   :  { %v1380_v9 = vsel %vm1379_vm6, %v1372_v54, %v3553_v40  ;;  %v1381_v6 = vsel %vm1379_vm6, %v1373_v11, %v3554_v46  ;;  %v1653_v60 = vsel %vm193_vm2, %v1631_v49, 0 }
 0xb83   :  { %v1633_v5 = vpop.permute.xlu0 %1632  ;;  %v1387_v53 = vpack.c.bf16 %v1381_v6, %v1380_v9 }
 0xb84   :  { %3491 = vmatprep.subr.msk.bf16.mxu1 %vm193_vm2, %v1633_v5  ;;  %v1656_v57 = vsel %vm193_vm2, %v1633_v5, 0 }
 0xb85   :  { %v3557_v59 = vpop.permute.xlu1 %3556  ;;  %3311 = vmatprep.mubr.msk.bf16.mxu1 %vm100_vm1, %v1387_v53 }
 0xb86   :  { %3312 = vmatmul.mubr.msk.bf16.vlgmr.msra.gmra.mxu1 %vm100_vm1, %v1388_v2  ;;  %v3559_v10 = vunpack.i.h.bf16 %v3557_v59  ;;  %v3558_v12 = vunpack.i.l.bf16 %v3557_v59 }
 0xb87   :  { %3332 = vmatpush3.bf16.xpose.msra.mxu1 %v1656_v57  ;;  %v1629_v18 = vpop.permute.xlu0 %1628 }
 0xb88   :  { %3492 = vmatprep.subr.msk.bf16.mxu1 %vm193_vm2, %v1631_v49  ;;  %v1369_v44 = vsel %vm193_vm2, %v4120_v17, %v3559_v10  ;;  %v1368_v45 = vsel %vm193_vm2, %v4118_v15, %v3558_v12  ;;  %v1650_v36 = vsel %vm193_vm2, %v1629_v18, 0 }
 0xb89   :  { %v3562_v3 = vpop.permute.xlu1 %3561 }
 0xb8a   :  { %v3564_v62 = vunpack.i.h.bf16 %v3562_v3  ;;  %v3563_v14 = vunpack.i.l.bf16 %v3562_v3 }
 0xb8b   :  { %v1300_v25 = vpop.permute.xlu0 %1299 }
 0xb8c   :  { %v1376_v63 = vsel %vm1371_vm5, %v1368_v45, %v3563_v14  ;;  %v1377_v43 = vsel %vm1371_vm5, %v1369_v44, %v3564_v62  ;;  %v1370_v17 = vsel %vm193_vm2, %v4116_v13, %v1300_v25 }
 0xb8d   :  { %v3567_v61 = vpop.permute.xlu1 %3566 }
 0xb8e   :  { %v3569_v52 = vunpack.i.h.bf16 %v3567_v61  ;;  %v3568_v1 = vunpack.i.l.bf16 %v3567_v61 }
 0xb8f   :  { %3334 = vmatpush3.bf16.xpose.msra.mxu1 %v1653_v60  ;;  %v1328_v4 = vpop.permute.xlu0 %1327 }
 0xb90   :  { %v1385_v28 = vsel %vm1379_vm6, %v1377_v43, %v3569_v52  ;;  %v1384_v29 = vsel %vm1379_vm6, %v1376_v63, %v3568_v1  ;;  %3493 = vmatprep.subr.msk.bf16.mxu1 %vm193_vm2, %v1629_v18  ;;  %v1378_v15 = vsel %vm1371_vm5, %v1370_v17, %v1328_v4 }
 0xb91   :  { %v1389_v31 = vpack.c.bf16 %v1385_v28, %v1384_v29  ;;  %v1627_v37 = vpop.permute.xlu1 %1626 }
 0xb92   :  { %v1647_v13 = vsel %vm193_vm2, %v1627_v37, 0 }
 0xb93   :  { %v1356_v24 = vpop.permute.xlu0 %1355  ;;  %3315 = vmatprep.mubr.msk.bf16.mxu1 %vm100_vm1, %v1389_v31 }
 0xb94   :  { %v1386_v30 = vsel %vm1379_vm6, %v1378_v15, %v1356_v24 }
 0xb95   :  { %v1390_v34 = vpack.c.bf16 %v1386_v30, %v1386_v30 }
 0xb97   :  { %3336 = vmatpush3.bf16.xpose.msra.mxu1 %v1650_v36 }
 0xb98   :  { %3316 = vmatmul.mubr.msk.bf16.gmra.mxu1 %vm100_vm1, %v1390_v34  ;;  %3494 = vmatprep.subr.msk.bf16.mxu1 %vm193_vm2, %v1627_v37 }
 0xb99   :  { %3339 = vmatprep.mubr.msk.bf16.mxu1 %vm193_vm2, %v4421_v56 }
 0xb9f   :  { %3338 = vmatpush3.bf16.xpose.msra.mxu1 %v1647_v13 }
 0xba6   :  { %3340 = vmatmul.mubr.msk.bf16.vlgmr.msra.gmra.mxu1 %vm193_vm2, %v4419_v7 }
 0xba7   :  { %3343 = vmatprep.mubr.msk.bf16.mxu1 %vm193_vm2, %v4430_v23 }
 0xbae   :  { %3344 = vmatmul.mubr.msk.bf16.gmra.mxu1 %vm193_vm2, %v4432_v32 }
 0xc46   :  { %v3313_v42 = vpop.f32.mrf.mxu1 }
 0xc47   :  { %v1464_v50 = vadd.f32 %v3313_v42, %v2953_v27 }
 0xc48   :  { %v1455_v51 = vpop.f32.mrf.mxu1 }
 0xc49   :  { %1487 = vst.msk [vmem:[%s4929_s6 + $0x10] sm:$0xff] %vm100_vm1, %v1464_v50  ;;  %v1456_v55 = vadd.f32 %v2953_v27, %v1455_v51 }
 0xc4a   :  { %v3314_v21 = vpop.f32.mrf.mxu1 }
 0xc4b   :  { %1485 = vst.msk [vmem:[%s4929_s6] sm:$0xff] %vm100_vm1, %v1456_v55  ;;  %v1467_v33 = vadd.f32 %v3314_v21, %v2953_v27 }
 0xc4c   :  { %v1458_v38 = vpop.f32.mrf.mxu1 }
 0xc4d   :  { %1488 = vst.msk [vmem:[%s4929_s6 + $0x18] sm:$0xff] %vm100_vm1, %v1467_v33  ;;  %v1459_v39 = vadd.f32 %v2953_v27, %v1458_v38 }
 0xc4f   :  { %1486 = vst.msk [vmem:[%s4929_s6 + $0x8] sm:$0xff] %vm100_vm1, %v1459_v39 }
 0xc58   :  { %v3317_v48 = vpop.f32.mrf.mxu1 }
 0xc59   :  { %v1480_v41 = vadd.f32 %v3317_v48, %v2953_v27 }
 0xc5a   :  { %v1471_v47 = vpop.f32.mrf.mxu1 }
 0xc5b   :  { %1492 = vst.msk [vmem:[%s4929_s6 + $0x30] sm:$0x3] %vm1491_vm7, %v1480_v41  ;;  %v1472_v26 = vadd.f32 %v2953_v27, %v1471_v47 }
 0xc5c   :  { %v3318_v35 = vpop.f32.mrf.mxu1 }
 0xc5d   :  { %1489 = vst.msk [vmem:[%s4929_s6 + $0x20] sm:$0xff] %vm100_vm1, %v1472_v26 }
 0xc5e   :  { %v1474_v22 = vpop.f32.mrf.mxu1 }
 0xc5f   :  { %v1475_v16 = vadd.f32 %v2953_v27, %v1474_v22 }
 0xc61   :  { %1490 = vst.msk [vmem:[%s4929_s6 + $0x28] sm:$0xff] %vm100_vm1, %v1475_v16 }
 0xc66   :  { %v3341_v58 = vpop.f32.mrf.mxu1 }
 0xc67   :  { %v1728_v19 = vsel %vm282_vm3, %v3341_v58, -inf }
 0xc68   :  { %1729 = vmax.xlane.f32.xlu0 %v1728_v19  ;;  %v1692_v20 = vpop.f32.mrf.mxu1 }
 0xc69   :  { %v1722_v40 = vsel %vm282_vm3, %v1692_v20, -inf }
 0xc6a   :  { %v3342_v46 = vpop.f32.mrf.mxu1 }
 0xc6b   :  { %v1731_v8 = vsel %vm282_vm3, %v3342_v46, -inf }
 0xc6c   :  { %1723 = vmax.xlane.f32.xlu0 %v1722_v40  ;;  %v1695_v54 = vpop.f32.mrf.mxu1 }
 0xc6d   :  { %v1725_v11 = vsel %vm282_vm3, %v1695_v54, -inf }
 0xc6e   :  { %1726 = vmax.xlane.f32.xlu1 %v1725_v11  ;;  %v3345_v0 = vpop.f32.mrf.mxu1 }
 0xc6f   :  { %v1740_v9 = vsel %vm301_vm4, %v3345_v0, -inf }
 0xc70   :  { %1732 = vmax.xlane.f32.xlu0 %v1731_v8  ;;  %v1708_v49 = vpop.f32.mrf.mxu1 }
 0xc71   :  { %v1734_v53 = vsel %vm282_vm3, %v1708_v49, -inf }
 0xc72   :  { %1741 = vmax.xlane.f32.xlu1 %v1740_v9  ;;  %v3346_v6 = vpop.f32.mrf.mxu1 }
 0xc74   :  { %v1711_v5 = vpop.f32.mrf.mxu1 }
 0xc75   :  { %v1737_v2 = vsel %vm282_vm3, %v1711_v5, -inf }
 0xc76   :  { %1735 = vmax.xlane.f32.xlu1 %v1734_v53  ;;  %1738 = vmax.xlane.f32.xlu0 %v1737_v2 }
 0xc87   :  { %1807 = vrot.lane.b32.xlu1 %v4430_v23, %s3853_s17 }
 0xc8b   :  { %1805 = vrot.lane.b32.xlu1 %v4419_v7, %s3853_s17 }
 0xc8c   :  { %1809 = vrot.lane.b32.xlu0 %v4432_v32, %s3853_s17 }
 0xc8f   :  { %1907 = vrot.lane.b32.xlu1 %v4432_v32, %s3854_s18 }
 0xcf1   :  { %v1730_v57 = vpop.xlane.xlu0 %1729 }
 0xcf2   :  { %v1745_v59 = vsub.f32 %v3341_v58, %v1730_v57 }
 0xcf4   :  { %v1754_v18 = vmul.f32 1.442695, %v1745_v59 }
 0xcf5   :  { %v1724_v3 = vpop.xlane.xlu0 %1723 }
 0xcf6   :  { %3731 = vpow2.f32 %v1754_v18  ;;  %v1743_v10 = vsub.f32 %v1692_v20, %v1724_v3 }
 0xcf7   :  { %v1727_v12 = vpop.xlane.xlu1 %1726 }
 0xcf8   :  { %v1750_v62 = vmul.f32 1.442695, %v1743_v10  ;;  %v1744_v14 = vsub.f32 %v1695_v54, %v1727_v12 }
 0xcf9   :  { %v1733_v25 = vpop.xlane.xlu0 %1732 }
 0xcfa   :  { %3733 = vpow2.f32 %v1750_v62  ;;  %v1746_v61 = vsub.f32 %v3342_v46, %v1733_v25  ;;  %v1752_v44 = vmul.f32 1.442695, %v1744_v14 }
 0xcfb   :  { %v1742_v60 = vpop.xlane.xlu1 %1741 }
 0xcfc   :  { %v1756_v45 = vmul.f32 1.442695, %v1746_v61  ;;  %v1749_v37 = vsub.f32 %v3345_v0, %v1742_v60 }
 0xcfe   :  { %3735 = vpow2.f32 %v1756_v45  ;;  %v1762_v13 = vmul.f32 1.442695, %v1749_v37 }
 0xcff   :  { %v1736_v52 = vpop.xlane.xlu1 %1735  ;;  %v1739_v1 = vpop.xlane.xlu0 %1738  ;;  %3737 = vpow2.f32 %v1752_v44 }
 0xd00   :  { %v1747_v27 = vsub.f32 %v1708_v49, %v1736_v52  ;;  %3739 = vpow2.f32 %v1762_v13  ;;  %v1748_v50 = vsub.f32 %v1711_v5, %v1739_v1 }
 0xd02   :  { %v1758_v42 = vmul.f32 1.442695, %v1747_v27  ;;  %v1760_v51 = vmul.f32 1.442695, %v1748_v50 }
 0xd03   :  { %v4551_v63 = vpop.eup %3731  ;;  %v1808_v43 = vpop.permute.xlu1 %1807 }
 0xd04   :  { %v1810_v4 = vpop.permute.xlu0 %1809  ;;  %v1770_v28 = vsel %vm282_vm3, %v4551_v63, 0.0  ;;  %3741 = vpow2.f32 %v1758_v42 }
 0xd05   :  { %3495 = vmatprep.subr.msk.bf16.mxu0 %vm55_vm0, %v1810_v4  ;;  %v1827_v29 = vsel %vm55_vm0, %v1810_v4, 0  ;;  %1771 = vadd.xlane.f32.xlu0 %v1770_v28  ;;  %3743 = vpow2.f32 %v1760_v51 }
 0xd06   :  { %3348 = vmatpush3.bf16.msra.mxu0 %v1827_v29 }
 0xd07   :  { %3349 = vmatprep.subr.bf16.mxu0 %v1808_v43  ;;  %v3734_v31 = vpop.eup %3733  ;;  %v1806_v15 = vpop.permute.xlu1 %1805 }
 0xd08   :  { %v1764_v17 = vsel %vm282_vm3, %v3734_v31, 0.0 }
 0xd09   :  { %1765 = vadd.xlane.f32.xlu0 %v1764_v17 }
 0xd0a   :  { %3350 = vmatpush3.bf16.msra.mxu0 %v1808_v43 }
 0xd0b   :  { %3351 = vmatprep.subr.bf16.mxu0 %v1806_v15  ;;  %v3736_v24 = vpop.eup %3735  ;;  %v1908_v47 = vpop.permute.xlu1 %1907 }
 0xd0c   :  { %v1773_v30 = vsel %vm282_vm3, %v3736_v24, 0.0  ;;  %v3738_v34 = vpop.eup %3737  ;;  %v1931_v9 = vsel %vm193_vm2, %v1908_v47, 0 }
 0xd0d   :  { %1774 = vadd.xlane.f32.xlu1 %v1773_v30  ;;  %v1767_v36 = vsel %vm282_vm3, %v3738_v34, 0.0  ;;  %v4564_v55 = vpop.eup %3739 }
 0xd0e   :  { %3352 = vmatpush3.bf16.msra.mxu0 %v1806_v15  ;;  %v1782_v21 = vsel %vm301_vm4, %v4564_v55, 0.0 }
 0xd11   :  { %1768 = vadd.xlane.f32.xlu1 %v1767_v36  ;;  %v3742_v33 = vpop.eup %3741 }
 0xd12   :  { %v1776_v38 = vsel %vm282_vm3, %v3742_v33, 0.0  ;;  %v3744_v39 = vpop.eup %3743 }
 0xd13   :  { %v1779_v48 = vsel %vm282_vm3, %v3744_v39, 0.0 }
 0xd1f   :  { %1803 = vrot.lane.b32.xlu0 %v4421_v56, %s3853_s17 }
 0xd22   :  { %1905 = vrot.lane.b32.xlu1 %v4430_v23, %s3854_s18 }
 0xd3e   :  { %1783 = vadd.xlane.f32.xlu0 %v1782_v21 }
 0xd42   :  { %1777 = vadd.xlane.f32.xlu0 %v1776_v38 }
 0xd46   :  { %1780 = vadd.xlane.f32.xlu1 %v1779_v48 }
 0xd57   :  { %1901 = vrot.lane.b32.xlu1 %v4421_v56, %s3854_s18 }
 0xd58   :  { %1903 = vrot.lane.b32.xlu0 %v4419_v7, %s3854_s18 }
 0xd5b   :  { %1895 = vrot.lane.b32.xlu1 %v4419_v7, %s3855_s19 }
 0xd5c   :  { %1893 = vrot.lane.b32.xlu0 %v4421_v56, %s3855_s19 }
 0xd5f   :  { %1899 = vrot.lane.b32.xlu1 %v4432_v32, %s3855_s19 }
 0xd60   :  { %1897 = vrot.lane.b32.xlu0 %v4430_v23, %s3855_s19 }
 0xd8e   :  { %v1772_v41 = vpop.xlane.xlu0 %1771 }
 0xd92   :  { %v1766_v26 = vpop.xlane.xlu0 %1765 }
 0xd96   :  { %v1775_v35 = vpop.xlane.xlu1 %1774  ;;  %v1804_v22 = vpop.permute.xlu0 %1803 }
 0xd97   :  { %3353 = vmatprep.subr.bf16.mxu0 %v1804_v22  ;;  %3745 = vrcp.f32 %v1775_v35 }
 0xd98   :  { %3354 = vmatpush3.bf16.msra.mxu0 %v1804_v22  ;;  %3747 = vrcp.f32 %v1766_v26 }
 0xd99   :  { %3496 = vmatprep.subr.msk.bf16.mxu0 %vm193_vm2, %v1908_v47  ;;  %3749 = vrcp.f32 %v1772_v41 }
 0xd9a   :  { %v1769_v16 = vpop.xlane.xlu1 %1768 }
 0xd9b   :  { %3751 = vrcp.f32 %v1769_v16 }
 0xd9e   :  { %v1906_v6 = vpop.permute.xlu1 %1905 }
 0xd9f   :  { %v1928_v5 = vsel %vm193_vm2, %v1906_v6, 0 }
 0xda4   :  { %v3746_v58 = vpop.eup %3745 }
 0xda5   :  { %v3748_v19 = vpop.eup %3747  ;;  %v1792_v40 = vmul.f32 %v3746_v58, %v3736_v24 }
 0xda6   :  { %v3750_v20 = vpop.eup %3749  ;;  %v1786_v54 = vmul.f32 %v3748_v19, %v3734_v31 }
 0xda7   :  { %v1790_v0 = vmul.f32 %v3750_v20, %v4551_v63 }
 0xda8   :  { %v3752_v46 = vpop.eup %3751 }
 0xda9   :  { %v1788_v11 = vmul.f32 %v3752_v46, %v3738_v34  ;;  %v1800_v49 = vpack.c.bf16 %v1792_v40, %v1790_v0 }
 0xdab   :  { %v1799_v8 = vpack.c.bf16 %v1788_v11, %v1786_v54 }
 0xdad   :  { %3355 = vmatprep.mubr.msk.bf16.mxu0 %vm282_vm3, %v1799_v8 }
 0xdae   :  { %3356 = vmatmul.mubr.msk.bf16.vlgmr.msra.gmra.mxu0 %vm282_vm3, %v1800_v49 }
 0xdaf   :  { %3364 = vmatpush3.bf16.xpose.msra.mxu0 %v1931_v9 }
 0xdb0   :  { %3497 = vmatprep.subr.msk.bf16.mxu0 %vm193_vm2, %v1906_v6 }
 0xdb7   :  { %3366 = vmatpush3.bf16.xpose.msra.mxu0 %v1928_v5 }
 0xdc7   :  { %v1784_v53 = vpop.xlane.xlu0 %1783 }
 0xdc8   :  { %3753 = vrcp.f32 %v1784_v53 }
 0xdcb   :  { %v1778_v2 = vpop.xlane.xlu0 %1777 }
 0xdcc   :  { %3755 = vrcp.f32 %v1778_v2 }
 0xdcf   :  { %v1781_v57 = vpop.xlane.xlu1 %1780  ;;  %v1904_v59 = vpop.permute.xlu0 %1903 }
 0xdd0   :  { %3757 = vrcp.f32 %v1781_v57  ;;  %v1925_v18 = vsel %vm193_vm2, %v1904_v59, 0  ;;  %3498 = vmatprep.subr.msk.bf16.mxu0 %vm193_vm2, %v1904_v59 }
 0xdd1   :  { %3368 = vmatpush3.bf16.xpose.msra.mxu0 %v1925_v18 }
 0xdd3   :  { %v1902_v3 = vpop.permute.xlu1 %1901  ;;  %v1894_v52 = vpop.permute.xlu0 %1893 }
 0xdd4   :  { %3499 = vmatprep.subr.msk.bf16.mxu0 %vm193_vm2, %v1902_v3  ;;  %v1922_v10 = vsel %vm193_vm2, %v1902_v3, 0 }
 0xdd5   :  { %v3754_v12 = vpop.eup %3753 }
 0xdd6   :  { %v1798_v25 = vmul.f32 %v3754_v12, %v4564_v55 }
 0xdd7   :  { %v1896_v1 = vpop.permute.xlu1 %1895  ;;  %v1898_v63 = vpop.permute.xlu0 %1897 }
 0xdd8   :  { %v1802_v45 = vpack.c.bf16 %v1798_v25, %v1798_v25 }
 0xdd9   :  { %3370 = vmatpush3.bf16.xpose.msra.mxu0 %v1922_v10  ;;  %v3756_v62 = vpop.eup %3755 }
 0xdda   :  { %v1794_v61 = vmul.f32 %v3756_v62, %v3742_v33 }
 0xddb   :  { %v1900_v43 = vpop.permute.xlu1 %1899 }
 0xddd   :  { %v3758_v14 = vpop.eup %3757 }
 0xdde   :  { %v1796_v60 = vmul.f32 %v3758_v14, %v3744_v39 }
 0xde0   :  { %v1801_v44 = vpack.c.bf16 %v1796_v60, %v1794_v61 }
 0xde2   :  { %3359 = vmatprep.mubr.msk.bf16.mxu0 %vm282_vm3, %v1801_v44 }
 0xde3   :  { %3360 = vmatmul.mubr.msk.bf16.gmra.mxu0 %vm282_vm3, %v1802_v45 }
 0xde4   :  { %3371 = vmatprep.mubr.msk.bf16.mxu0 %vm193_vm2, %v1894_v52 }
 0xdeb   :  { %3372 = vmatmul.mubr.msk.bf16.vlgmr.msra.gmra.mxu0 %vm193_vm2, %v1896_v1 }
 0xdec   :  { %3375 = vmatprep.mubr.msk.bf16.mxu0 %vm193_vm2, %v1898_v63 }
 0xdf3   :  { %3376 = vmatmul.mubr.msk.bf16.gmra.mxu0 %vm193_vm2, %v1900_v43 }
 0xe6e   :  { %v4600_v4 = vpop.f32.mrf.mxu0 }
 0xe70   :  { %v4602_v28 = vpop.f32.mrf.mxu0 }
 0xe72   :  { %v4604_v29 = vpop.f32.mrf.mxu0 }
 0xe74   :  { %v4606_v31 = vpop.f32.mrf.mxu0 }
 0xea3   :  { %v4608_v17 = vpop.f32.mrf.mxu0 }
 0xea5   :  { %v4610_v15 = vpop.f32.mrf.mxu0 }
 0xea7   :  { %v3362_v24 = vpop.f32.mrf.mxu0 }
 0xea9   :  { %v4612_v30 = vpop.f32.mrf.mxu0 }
 0xeab   :  { %v3373_v34 = vpop.f32.mrf.mxu0 }
 0xeac   :  { %v2003_v36 = vsel %vm282_vm3, %v3373_v34, -inf }
 0xead   :  { %2004 = vmax.xlane.f32.xlu0 %v2003_v36  ;;  %v1967_v37 = vpop.f32.mrf.mxu0 }
 0xeae   :  { %v1997_v27 = vsel %vm282_vm3, %v1967_v37, -inf }
 0xeaf   :  { %v3374_v13 = vpop.f32.mrf.mxu0 }
 0xeb0   :  { %v2006_v55 = vsel %vm282_vm3, %v3374_v13, -inf }
 0xeb1   :  { %1998 = vmax.xlane.f32.xlu0 %v1997_v27  ;;  %v1970_v42 = vpop.f32.mrf.mxu0 }
 0xeb2   :  { %v2000_v50 = vsel %vm282_vm3, %v1970_v42, -inf }
 0xeb3   :  { %2001 = vmax.xlane.f32.xlu1 %v2000_v50  ;;  %v3377_v51 = vpop.f32.mrf.mxu0 }
 0xeb4   :  { %v2015_v33 = vsel %vm301_vm4, %v3377_v51, -inf }
 0xeb5   :  { %2007 = vmax.xlane.f32.xlu0 %v2006_v55  ;;  %v1983_v21 = vpop.f32.mrf.mxu0 }
 0xeb6   :  { %v2009_v48 = vsel %vm282_vm3, %v1983_v21, -inf }
 0xeb7   :  { %2016 = vmax.xlane.f32.xlu1 %v2015_v33  ;;  %v3378_v38 = vpop.f32.mrf.mxu0 }
 0xeb9   :  { %v1986_v39 = vpop.f32.mrf.mxu0 }
 0xeba   :  { %v2012_v41 = vsel %vm282_vm3, %v1986_v39, -inf }
 0xebb   :  { %2010 = vmax.xlane.f32.xlu1 %v2009_v48  ;;  %2013 = vmax.xlane.f32.xlu0 %v2012_v41 }
 0xecc   :  { %2082 = vrot.lane.b32.xlu1 %v4430_v23, %s3856_s20 }
 0xed0   :  { %2080 = vrot.lane.b32.xlu1 %v4419_v7, %s3856_s20 }
 0xed1   :  { %2084 = vrot.lane.b32.xlu0 %v4432_v32, %s3856_s20 }
 0xed4   :  { %2182 = vrot.lane.b32.xlu1 %v4432_v32, %s3857_s1 }
 0xf36   :  { %v2005_v47 = vpop.xlane.xlu0 %2004 }
 0xf37   :  { %v2020_v26 = vsub.f32 %v3373_v34, %v2005_v47 }
 0xf39   :  { %v2029_v35 = vmul.f32 1.442695, %v2020_v26 }
 0xf3a   :  { %v1999_v22 = vpop.xlane.xlu0 %1998 }
 0xf3b   :  { %3759 = vpow2.f32 %v2029_v35  ;;  %v2018_v16 = vsub.f32 %v1967_v37, %v1999_v22 }
 0xf3c   :  { %v2002_v58 = vpop.xlane.xlu1 %2001 }
 0xf3d   :  { %v2025_v19 = vmul.f32 1.442695, %v2018_v16  ;;  %v2019_v20 = vsub.f32 %v1970_v42, %v2002_v58 }
 0xf3e   :  { %v2008_v46 = vpop.xlane.xlu0 %2007 }
 0xf3f   :  { %3761 = vpow2.f32 %v2025_v19  ;;  %v2021_v40 = vsub.f32 %v3374_v13, %v2008_v46  ;;  %v2027_v11 = vmul.f32 1.442695, %v2019_v20 }
 0xf40   :  { %v2017_v54 = vpop.xlane.xlu1 %2016 }
 0xf41   :  { %v2031_v0 = vmul.f32 1.442695, %v2021_v40  ;;  %v2024_v14 = vsub.f32 %v3377_v51, %v2017_v54 }
 0xf43   :  { %3763 = vpow2.f32 %v2031_v0  ;;  %v2037_v25 = vmul.f32 1.442695, %v2024_v14 }
 0xf44   :  { %v2011_v8 = vpop.xlane.xlu1 %2010  ;;  %v2014_v49 = vpop.xlane.xlu0 %2013  ;;  %3765 = vpow2.f32 %v2027_v11 }
 0xf45   :  { %v2022_v61 = vsub.f32 %v1983_v21, %v2011_v8  ;;  %3767 = vpow2.f32 %v2037_v25  ;;  %v2023_v44 = vsub.f32 %v1986_v39, %v2014_v49 }
 0xf47   :  { %v2033_v60 = vmul.f32 1.442695, %v2022_v61  ;;  %v2035_v45 = vmul.f32 1.442695, %v2023_v44 }
 0xf48   :  { %v4629_v9 = vpop.eup %3759  ;;  %v2083_v6 = vpop.permute.xlu1 %2082 }
 0xf49   :  { %v2085_v5 = vpop.permute.xlu0 %2084  ;;  %v2045_v2 = vsel %vm282_vm3, %v4629_v9, 0.0  ;;  %3769 = vpow2.f32 %v2033_v60 }
 0xf4a   :  { %v2102_v53 = vsel %vm55_vm0, %v2085_v5, 0  ;;  %3500 = vmatprep.subr.msk.bf16.mxu1 %vm55_vm0, %v2085_v5  ;;  %2046 = vadd.xlane.f32.xlu0 %v2045_v2  ;;  %3771 = vpow2.f32 %v2035_v45 }
 0xf4b   :  { %3380 = vmatpush3.bf16.msra.mxu1 %v2102_v53 }
 0xf4c   :  { %3381 = vmatprep.subr.bf16.mxu1 %v2083_v6  ;;  %v3762_v57 = vpop.eup %3761  ;;  %v2081_v18 = vpop.permute.xlu1 %2080 }
 0xf4d   :  { %v2039_v59 = vsel %vm282_vm3, %v3762_v57, 0.0 }
 0xf4e   :  { %2040 = vadd.xlane.f32.xlu0 %v2039_v59 }
 0xf4f   :  { %3382 = vmatpush3.bf16.msra.mxu1 %v2083_v6 }
 0xf50   :  { %3383 = vmatprep.subr.bf16.mxu1 %v2081_v18  ;;  %v3764_v3 = vpop.eup %3763  ;;  %v2183_v37 = vpop.permute.xlu1 %2182 }
 0xf51   :  { %v2048_v10 = vsel %vm282_vm3, %v3764_v3, 0.0  ;;  %v3766_v12 = vpop.eup %3765  ;;  %v2206_v35 = vsel %vm193_vm2, %v2183_v37, 0 }
 0xf52   :  { %2049 = vadd.xlane.f32.xlu1 %v2048_v10  ;;  %v2042_v62 = vsel %vm282_vm3, %v3766_v12, 0.0  ;;  %v4642_v52 = vpop.eup %3767 }
 0xf53   :  { %3384 = vmatpush3.bf16.msra.mxu1 %v2081_v18  ;;  %v2057_v1 = vsel %vm301_vm4, %v4642_v52, 0.0 }
 0xf56   :  { %2043 = vadd.xlane.f32.xlu1 %v2042_v62  ;;  %v3770_v63 = vpop.eup %3769 }
 0xf57   :  { %v2051_v43 = vsel %vm282_vm3, %v3770_v63, 0.0  ;;  %v3772_v24 = vpop.eup %3771 }
 0xf58   :  { %v2054_v34 = vsel %vm282_vm3, %v3772_v24, 0.0 }
 0xf64   :  { %2078 = vrot.lane.b32.xlu0 %v4421_v56, %s3856_s20 }
 0xf67   :  { %2180 = vrot.lane.b32.xlu1 %v4430_v23, %s3857_s1 }
 0xf83   :  { %2058 = vadd.xlane.f32.xlu0 %v2057_v1 }
 0xf87   :  { %2052 = vadd.xlane.f32.xlu0 %v2051_v43 }
 0xf8b   :  { %2055 = vadd.xlane.f32.xlu1 %v2054_v34 }
 0xf9c   :  { %2176 = vrot.lane.b32.xlu1 %v4421_v56, %s3857_s1 }
 0xf9d   :  { %2178 = vrot.lane.b32.xlu0 %v4419_v7, %s3857_s1 }
 0xfa0   :  { %2170 = vrot.lane.b32.xlu1 %v4419_v7, %s3858_s21 }
 0xfa1   :  { %2168 = vrot.lane.b32.xlu0 %v4421_v56, %s3858_s21 }
 0xfa4   :  { %2174 = vrot.lane.b32.xlu1 %v4432_v32, %s3858_s21 }
 0xfa5   :  { %2172 = vrot.lane.b32.xlu0 %v4430_v23, %s3858_s21 }
 0xfd3   :  { %v2047_v36 = vpop.xlane.xlu0 %2046 }
 0xfd7   :  { %v2041_v13 = vpop.xlane.xlu0 %2040 }
 0xfdb   :  { %v2050_v27 = vpop.xlane.xlu1 %2049  ;;  %v2079_v42 = vpop.permute.xlu0 %2078 }
 0xfdc   :  { %3385 = vmatprep.subr.bf16.mxu1 %v2079_v42  ;;  %3773 = vrcp.f32 %v2050_v27 }
 0xfdd   :  { %3386 = vmatpush3.bf16.msra.mxu1 %v2079_v42  ;;  %3775 = vrcp.f32 %v2041_v13 }
 0xfde   :  { %3501 = vmatprep.subr.msk.bf16.mxu1 %vm193_vm2, %v2183_v37  ;;  %3777 = vrcp.f32 %v2047_v36 }
 0xfdf   :  { %v2044_v50 = vpop.xlane.xlu1 %2043 }
 0xfe0   :  { %3779 = vrcp.f32 %v2044_v50 }
 0xfe3   :  { %v2181_v22 = vpop.permute.xlu1 %2180 }
 0xfe4   :  { %v2203_v16 = vsel %vm193_vm2, %v2181_v22, 0 }
 0xfe9   :  { %v3774_v51 = vpop.eup %3773 }
 0xfea   :  { %v3776_v55 = vpop.eup %3775  ;;  %v2067_v38 = vmul.f32 %v3774_v51, %v3764_v3 }
 0xfeb   :  { %v3778_v21 = vpop.eup %3777  ;;  %v2061_v39 = vmul.f32 %v3776_v55, %v3762_v57 }
 0xfec   :  { %v2065_v41 = vmul.f32 %v3778_v21, %v4629_v9 }
 0xfed   :  { %v3780_v33 = vpop.eup %3779 }
 0xfee   :  { %v2063_v48 = vmul.f32 %v3780_v33, %v3766_v12  ;;  %v2075_v26 = vpack.c.bf16 %v2067_v38, %v2065_v41 }
 0xff0   :  { %v2074_v47 = vpack.c.bf16 %v2063_v48, %v2061_v39 }
 0xff2   :  { %3387 = vmatprep.mubr.msk.bf16.mxu1 %vm282_vm3, %v2074_v47 }
 0xff3   :  { %3388 = vmatmul.mubr.msk.bf16.vlgmr.msra.gmra.mxu1 %vm282_vm3, %v2075_v26 }
 0xff4   :  { %3396 = vmatpush3.bf16.xpose.msra.mxu1 %v2206_v35 }
 0xff5   :  { %3502 = vmatprep.subr.msk.bf16.mxu1 %vm193_vm2, %v2181_v22 }
 0xffc   :  { %3398 = vmatpush3.bf16.xpose.msra.mxu1 %v2203_v16 }
0x100c   :  { %v2059_v58 = vpop.xlane.xlu0 %2058 }
0x100d   :  { %3781 = vrcp.f32 %v2059_v58 }
0x1010   :  { %v2053_v19 = vpop.xlane.xlu0 %2052 }
0x1011   :  { %3783 = vrcp.f32 %v2053_v19 }
0x1014   :  { %v2056_v20 = vpop.xlane.xlu1 %2055  ;;  %v2179_v46 = vpop.permute.xlu0 %2178 }
0x1015   :  { %3785 = vrcp.f32 %v2056_v20  ;;  %v2200_v40 = vsel %vm193_vm2, %v2179_v46, 0  ;;  %3503 = vmatprep.subr.msk.bf16.mxu1 %vm193_vm2, %v2179_v46 }
0x1016   :  { %3400 = vmatpush3.bf16.xpose.msra.mxu1 %v2200_v40 }
0x1018   :  { %v2177_v54 = vpop.permute.xlu1 %2176  ;;  %v2169_v57 = vpop.permute.xlu0 %2168 }
0x1019   :  { %3504 = vmatprep.subr.msk.bf16.mxu1 %vm193_vm2, %v2177_v54  ;;  %v2197_v11 = vsel %vm193_vm2, %v2177_v54, 0 }
0x101a   :  { %v3782_v0 = vpop.eup %3781 }
0x101b   :  { %v2073_v9 = vmul.f32 %v3782_v0, %v4642_v52 }
0x101c   :  { %v2171_v59 = vpop.permute.xlu1 %2170  ;;  %v2173_v18 = vpop.permute.xlu0 %2172 }
0x101d   :  { %v2077_v2 = vpack.c.bf16 %v2073_v9, %v2073_v9 }
0x101e   :  { %3402 = vmatpush3.bf16.xpose.msra.mxu1 %v2197_v11  ;;  %v3784_v8 = vpop.eup %3783 }
0x101f   :  { %v2069_v6 = vmul.f32 %v3784_v8, %v3770_v63 }
0x1020   :  { %v2175_v3 = vpop.permute.xlu1 %2174 }
0x1022   :  { %v3786_v49 = vpop.eup %3785 }
0x1023   :  { %v2071_v5 = vmul.f32 %v3786_v49, %v3772_v24 }
0x1025   :  { %v2076_v53 = vpack.c.bf16 %v2071_v5, %v2069_v6 }
0x1027   :  { %3391 = vmatprep.mubr.msk.bf16.mxu1 %vm282_vm3, %v2076_v53 }
0x1028   :  { %3392 = vmatmul.mubr.msk.bf16.gmra.mxu1 %vm282_vm3, %v2077_v2 }
0x1029   :  { %3403 = vmatprep.mubr.msk.bf16.mxu1 %vm193_vm2, %v2169_v57 }
0x1030   :  { %3404 = vmatmul.mubr.msk.bf16.vlgmr.msra.gmra.mxu1 %vm193_vm2, %v2171_v59 }
0x1031   :  { %3407 = vmatprep.mubr.msk.bf16.mxu1 %vm193_vm2, %v2173_v18 }
0x1038   :  { %3408 = vmatmul.mubr.msk.bf16.gmra.mxu1 %vm193_vm2, %v2175_v3 }
0x10b3   :  { %v4678_v10 = vpop.f32.mrf.mxu1 }
0x10b5   :  { %v4680_v12 = vpop.f32.mrf.mxu1 }
0x10b7   :  { %v4682_v62 = vpop.f32.mrf.mxu1 }
0x10b8   :  { %v3575_v14 = vpack.i.bf16 %v4682_v62, %v4678_v10 }
0x10b9   :  { %v4686_v25 = vpop.f32.mrf.mxu1 }
0x10ba   :  { %v3570_v61 = vpack.i.bf16 %v4686_v25, %v4680_v12 }
0x10e8   :  { %v4690_v60 = vpop.f32.mrf.mxu1 }
0x10ea   :  { %v4692_v44 = vpop.f32.mrf.mxu1 }
0x10ec   :  { %v3394_v45 = vpop.f32.mrf.mxu1 }
0x10ee   :  { %v4694_v52 = vpop.f32.mrf.mxu1 }
0x10ef   :  { %v3590_v1 = vpack.i.bf16 %v4694_v52, %v4692_v44 }
0x10f0   :  { %v3405_v63 = vpop.f32.mrf.mxu1 }
0x10f1   :  { %v2278_v43 = vsel %vm282_vm3, %v3405_v63, -inf }
0x10f2   :  { %2279 = vmax.xlane.f32.xlu0 %v2278_v43  ;;  %v2242_v24 = vpop.f32.mrf.mxu1 }
0x10f3   :  { %v2272_v36 = vsel %vm282_vm3, %v2242_v24, -inf }
0x10f4   :  { %v3406_v34 = vpop.f32.mrf.mxu1 }
0x10f5   :  { %v2281_v42 = vsel %vm282_vm3, %v3406_v34, -inf }
0x10f6   :  { %2273 = vmax.xlane.f32.xlu0 %v2272_v36  ;;  %v2245_v37 = vpop.f32.mrf.mxu1 }
0x10f7   :  { %v2275_v13 = vsel %vm282_vm3, %v2245_v37, -inf }
0x10f8   :  { %2276 = vmax.xlane.f32.xlu1 %v2275_v13  ;;  %v3409_v27 = vpop.f32.mrf.mxu1 }
0x10f9   :  { %v2290_v51 = vsel %vm301_vm4, %v3409_v27, -inf }
0x10fa   :  { %2282 = vmax.xlane.f32.xlu0 %v2281_v42  ;;  %v2258_v50 = vpop.f32.mrf.mxu1 }
0x10fb   :  { %v2284_v33 = vsel %vm282_vm3, %v2258_v50, -inf }
0x10fc   :  { %2291 = vmax.xlane.f32.xlu1 %v2290_v51  ;;  %v3410_v55 = vpop.f32.mrf.mxu1 }
0x10fe   :  { %v2261_v21 = vpop.f32.mrf.mxu1 }
0x10ff   :  { %v2287_v38 = vsel %vm282_vm3, %v2261_v21, -inf }
0x1100   :  { %2285 = vmax.xlane.f32.xlu1 %v2284_v33  ;;  %2288 = vmax.xlane.f32.xlu0 %v2287_v38 }
0x1111   :  { %2357 = vrot.lane.b32.xlu1 %v4430_v23, %s3859_s22 }
0x1115   :  { %2355 = vrot.lane.b32.xlu1 %v4419_v7, %s3859_s22 }
0x1116   :  { %2359 = vrot.lane.b32.xlu0 %v4432_v32, %s3859_s22 }
0x1119   :  { %2457 = vrot.lane.b32.xlu1 %v4432_v32, %s3860_s23 }
0x117b   :  { %v2280_v39 = vpop.xlane.xlu0 %2279 }
0x117c   :  { %v2295_v48 = vsub.f32 %v3405_v63, %v2280_v39 }
0x117e   :  { %v2304_v41 = vmul.f32 1.442695, %v2295_v48 }
0x117f   :  { %v2274_v47 = vpop.xlane.xlu0 %2273 }
0x1180   :  { %3787 = vpow2.f32 %v2304_v41  ;;  %v2293_v26 = vsub.f32 %v2242_v24, %v2274_v47 }
0x1181   :  { %v2277_v35 = vpop.xlane.xlu1 %2276 }
0x1182   :  { %v2300_v22 = vmul.f32 1.442695, %v2293_v26  ;;  %v2294_v16 = vsub.f32 %v2245_v37, %v2277_v35 }
0x1183   :  { %v2283_v58 = vpop.xlane.xlu0 %2282 }
0x1184   :  { %3789 = vpow2.f32 %v2300_v22  ;;  %v2296_v19 = vsub.f32 %v3406_v34, %v2283_v58  ;;  %v2302_v46 = vmul.f32 1.442695, %v2294_v16 }
0x1185   :  { %v2292_v20 = vpop.xlane.xlu1 %2291 }
0x1186   :  { %v2306_v40 = vmul.f32 1.442695, %v2296_v19  ;;  %v2299_v45 = vsub.f32 %v3409_v27, %v2292_v20 }
0x1188   :  { %3791 = vpow2.f32 %v2306_v40  ;;  %v2312_v63 = vmul.f32 1.442695, %v2299_v45 }
0x1189   :  { %v2286_v54 = vpop.xlane.xlu1 %2285  ;;  %v2289_v11 = vpop.xlane.xlu0 %2288  ;;  %3793 = vpow2.f32 %v2302_v46 }
0x118a   :  { %v2297_v43 = vsub.f32 %v2258_v50, %v2286_v54  ;;  %3795 = vpow2.f32 %v2312_v63  ;;  %v2298_v34 = vsub.f32 %v2261_v21, %v2289_v11 }
0x118c   :  { %v2308_v24 = vmul.f32 1.442695, %v2297_v43  ;;  %v2310_v36 = vmul.f32 1.442695, %v2298_v34 }
0x118d   :  { %v4713_v0 = vpop.eup %3787  ;;  %v2358_v8 = vpop.permute.xlu1 %2357 }
0x118e   :  { %v2360_v49 = vpop.permute.xlu0 %2359  ;;  %v2320_v6 = vsel %vm282_vm3, %v4713_v0, 0.0  ;;  %3797 = vpow2.f32 %v2308_v24 }
0x118f   :  { %v2377_v9 = vsel %vm55_vm0, %v2360_v49, 0  ;;  %3505 = vmatprep.subr.msk.bf16.mxu0 %vm55_vm0, %v2360_v49  ;;  %2321 = vadd.xlane.f32.xlu0 %v2320_v6  ;;  %3799 = vpow2.f32 %v2310_v36 }
0x1190   :  { %3412 = vmatpush3.bf16.msra.mxu0 %v2377_v9 }
0x1191   :  { %3413 = vmatprep.subr.bf16.mxu0 %v2358_v8  ;;  %v3790_v5 = vpop.eup %3789  ;;  %v2356_v2 = vpop.permute.xlu1 %2355 }
0x1192   :  { %v2314_v53 = vsel %vm282_vm3, %v3790_v5, 0.0 }
0x1193   :  { %2315 = vadd.xlane.f32.xlu0 %v2314_v53 }
0x1194   :  { %3414 = vmatpush3.bf16.msra.mxu0 %v2358_v8 }
0x1195   :  { %3415 = vmatprep.subr.bf16.mxu0 %v2356_v2  ;;  %v3792_v57 = vpop.eup %3791  ;;  %v2458_v21 = vpop.permute.xlu1 %2457 }
0x1196   :  { %v2323_v59 = vsel %vm282_vm3, %v3792_v57, 0.0  ;;  %v3794_v18 = vpop.eup %3793  ;;  %v2481_v40 = vsel %vm193_vm2, %v2458_v21, 0 }
0x1197   :  { %2324 = vadd.xlane.f32.xlu1 %v2323_v59  ;;  %v2317_v3 = vsel %vm282_vm3, %v3794_v18, 0.0  ;;  %v4726_v37 = vpop.eup %3795 }
0x1198   :  { %3416 = vmatpush3.bf16.msra.mxu0 %v2356_v2  ;;  %v2332_v13 = vsel %vm301_vm4, %v4726_v37, 0.0 }
0x119b   :  { %2318 = vadd.xlane.f32.xlu1 %v2317_v3  ;;  %v3798_v42 = vpop.eup %3797 }
0x119c   :  { %v2326_v51 = vsel %vm282_vm3, %v3798_v42, 0.0  ;;  %v3800_v55 = vpop.eup %3799 }
0x119d   :  { %v2329_v27 = vsel %vm282_vm3, %v3800_v55, 0.0 }
0x11a9   :  { %2353 = vrot.lane.b32.xlu0 %v4421_v56, %s3859_s22 }
0x11ac   :  { %2455 = vrot.lane.b32.xlu1 %v4430_v23, %s3860_s23 }
0x11c8   :  { %2333 = vadd.xlane.f32.xlu0 %v2332_v13 }
0x11cc   :  { %2327 = vadd.xlane.f32.xlu0 %v2326_v51 }
0x11d0   :  { %2330 = vadd.xlane.f32.xlu1 %v2329_v27 }
0x11e1   :  { %2451 = vrot.lane.b32.xlu1 %v4421_v56, %s3860_s23 }
0x11e2   :  { %2453 = vrot.lane.b32.xlu0 %v4419_v7, %s3860_s23 }
0x11e5   :  { %2445 = vrot.lane.b32.xlu1 %v4419_v7, %s3861_s24 }
0x11e6   :  { %2443 = vrot.lane.b32.xlu0 %v4421_v56, %s3861_s24 }
0x11e9   :  { %2449 = vrot.lane.b32.xlu1 %v4432_v32, %s3861_s24 }
0x11ea   :  { %2447 = vrot.lane.b32.xlu0 %v4430_v23, %s3861_s24 }
0x1218   :  { %v2322_v50 = vpop.xlane.xlu0 %2321 }
0x121c   :  { %v2316_v33 = vpop.xlane.xlu0 %2315 }
0x1220   :  { %v2325_v38 = vpop.xlane.xlu1 %2324  ;;  %v2354_v39 = vpop.permute.xlu0 %2353 }
0x1221   :  { %3417 = vmatprep.subr.bf16.mxu0 %v2354_v39  ;;  %3801 = vrcp.f32 %v2325_v38 }
0x1222   :  { %3418 = vmatpush3.bf16.msra.mxu0 %v2354_v39  ;;  %3803 = vrcp.f32 %v2316_v33 }
0x1223   :  { %3506 = vmatprep.subr.msk.bf16.mxu0 %vm193_vm2, %v2458_v21  ;;  %3805 = vrcp.f32 %v2322_v50 }
0x1224   :  { %v2319_v48 = vpop.xlane.xlu1 %2318 }
0x1225   :  { %3807 = vrcp.f32 %v2319_v48 }
0x1228   :  { %v2456_v54 = vpop.permute.xlu1 %2455 }
0x1229   :  { %v2478_v11 = vsel %vm193_vm2, %v2456_v54, 0 }
0x122e   :  { %v3802_v41 = vpop.eup %3801 }
0x122f   :  { %v3804_v47 = vpop.eup %3803  ;;  %v2342_v22 = vmul.f32 %v3802_v41, %v3792_v57 }
0x1230   :  { %v3806_v26 = vpop.eup %3805  ;;  %v2336_v16 = vmul.f32 %v3804_v47, %v3790_v5 }
0x1231   :  { %v2340_v19 = vmul.f32 %v3806_v26, %v4713_v0 }
0x1232   :  { %v3808_v35 = vpop.eup %3807 }
0x1233   :  { %v2338_v58 = vmul.f32 %v3808_v35, %v3794_v18  ;;  %v2350_v46 = vpack.c.bf16 %v2342_v22, %v2340_v19 }
0x1235   :  { %v2349_v20 = vpack.c.bf16 %v2338_v58, %v2336_v16 }
0x1237   :  { %3419 = vmatprep.mubr.msk.bf16.mxu0 %vm282_vm3, %v2349_v20 }
0x1238   :  { %3420 = vmatmul.mubr.msk.bf16.vlgmr.msra.gmra.mxu0 %vm282_vm3, %v2350_v46 }
0x1239   :  { %3428 = vmatpush3.bf16.xpose.msra.mxu0 %v2481_v40 }
0x123a   :  { %3507 = vmatprep.subr.msk.bf16.mxu0 %vm193_vm2, %v2456_v54 }
0x1241   :  { %3430 = vmatpush3.bf16.xpose.msra.mxu0 %v2478_v11 }
0x1251   :  { %v2334_v8 = vpop.xlane.xlu0 %2333 }
0x1252   :  { %3809 = vrcp.f32 %v2334_v8 }
0x1255   :  { %v2328_v49 = vpop.xlane.xlu0 %2327 }
0x1256   :  { %3811 = vrcp.f32 %v2328_v49 }
0x1259   :  { %v2331_v0 = vpop.xlane.xlu1 %2330  ;;  %v2454_v9 = vpop.permute.xlu0 %2453 }
0x125a   :  { %3813 = vrcp.f32 %v2331_v0  ;;  %v2475_v6 = vsel %vm193_vm2, %v2454_v9, 0  ;;  %3508 = vmatprep.subr.msk.bf16.mxu0 %vm193_vm2, %v2454_v9 }
0x125b   :  { %3432 = vmatpush3.bf16.xpose.msra.mxu0 %v2475_v6 }
0x125d   :  { %v2452_v5 = vpop.permute.xlu1 %2451  ;;  %v2444_v24 = vpop.permute.xlu0 %2443 }
0x125e   :  { %3509 = vmatprep.subr.msk.bf16.mxu0 %vm193_vm2, %v2452_v5  ;;  %v2472_v53 = vsel %vm193_vm2, %v2452_v5, 0 }
0x125f   :  { %v3810_v2 = vpop.eup %3809 }
0x1260   :  { %v2348_v18 = vmul.f32 %v3810_v2, %v4726_v37 }
0x1261   :  { %v2446_v34 = vpop.permute.xlu1 %2445  ;;  %v2448_v36 = vpop.permute.xlu0 %2447 }
0x1262   :  { %v2352_v43 = vpack.c.bf16 %v2348_v18, %v2348_v18 }
0x1263   :  { %3434 = vmatpush3.bf16.xpose.msra.mxu0 %v2472_v53  ;;  %v3812_v57 = vpop.eup %3811 }
0x1264   :  { %v2344_v3 = vmul.f32 %v3812_v57, %v3798_v42 }
0x1265   :  { %v2450_v13 = vpop.permute.xlu1 %2449 }
0x1267   :  { %v3814_v59 = vpop.eup %3813 }
0x1268   :  { %v2346_v45 = vmul.f32 %v3814_v59, %v3800_v55 }
0x126a   :  { %v2351_v63 = vpack.c.bf16 %v2346_v45, %v2344_v3 }
0x126c   :  { %3423 = vmatprep.mubr.msk.bf16.mxu0 %vm282_vm3, %v2351_v63 }
0x126d   :  { %3424 = vmatmul.mubr.msk.bf16.gmra.mxu0 %vm282_vm3, %v2352_v43 }
0x126e   :  { %3435 = vmatprep.mubr.msk.bf16.mxu0 %vm193_vm2, %v2444_v24 }
0x1275   :  { %3436 = vmatmul.mubr.msk.bf16.vlgmr.msra.gmra.mxu0 %vm193_vm2, %v2446_v34 }
0x1276   :  { %3439 = vmatprep.mubr.msk.bf16.mxu0 %vm193_vm2, %v2448_v36 }
0x127d   :  { %3440 = vmatmul.mubr.msk.bf16.gmra.mxu0 %vm193_vm2, %v2450_v13 }
0x12f8   :  { %v4762_v37 = vpop.f32.mrf.mxu0 }
0x12fa   :  { %v4764_v42 = vpop.f32.mrf.mxu0 }
0x12fc   :  { %v4766_v51 = vpop.f32.mrf.mxu0 }
0x12fd   :  { %v3585_v55 = vpack.i.bf16 %v4766_v51, %v4762_v37 }
0x12fe   :  { %v4770_v27 = vpop.f32.mrf.mxu0 }
0x12ff   :  { %v3580_v50 = vpack.i.bf16 %v4770_v27, %v4764_v42 }
0x132d   :  { %v4774_v21 = vpop.f32.mrf.mxu0 }
0x132f   :  { %v4776_v33 = vpop.f32.mrf.mxu0 }
0x1331   :  { %v3426_v38 = vpop.f32.mrf.mxu0 }
0x1333   :  { %v4778_v39 = vpop.f32.mrf.mxu0 }
0x1334   :  { %v3605_v48 = vpack.i.bf16 %v4778_v39, %v4776_v33 }
0x1335   :  { %v3437_v41 = vpop.f32.mrf.mxu0 }
0x1336   :  { %v2553_v47 = vsel %vm282_vm3, %v3437_v41, -inf }
0x1337   :  { %2554 = vmax.xlane.f32.xlu0 %v2553_v47  ;;  %v2517_v26 = vpop.f32.mrf.mxu0 }
0x1338   :  { %v2547_v22 = vsel %vm282_vm3, %v2517_v26, -inf }
0x1339   :  { %v3438_v35 = vpop.f32.mrf.mxu0 }
0x133a   :  { %v2556_v20 = vsel %vm282_vm3, %v3438_v35, -inf }
0x133b   :  { %2548 = vmax.xlane.f32.xlu0 %v2547_v22  ;;  %v2520_v16 = vpop.f32.mrf.mxu0 }
0x133c   :  { %v2550_v58 = vsel %vm282_vm3, %v2520_v16, -inf }
0x133d   :  { %2551 = vmax.xlane.f32.xlu1 %v2550_v58  ;;  %v3441_v19 = vpop.f32.mrf.mxu0 }
0x133e   :  { %v2565_v49 = vsel %vm301_vm4, %v3441_v19, -inf }
0x133f   :  { %2557 = vmax.xlane.f32.xlu0 %v2556_v20  ;;  %v2533_v46 = vpop.f32.mrf.mxu0 }
0x1340   :  { %v2559_v40 = vsel %vm282_vm3, %v2533_v46, -inf }
0x1341   :  { %2560 = vmax.xlane.f32.xlu1 %v2559_v40  ;;  %v3442_v54 = vpop.f32.mrf.mxu0 }
0x1343   :  { %v2536_v11 = vpop.f32.mrf.mxu0 }
0x1344   :  { %v2562_v8 = vsel %vm282_vm3, %v2536_v11, -inf }
0x1345   :  { %2566 = vmax.xlane.f32.xlu1 %v2565_v49  ;;  %2563 = vmax.xlane.f32.xlu0 %v2562_v8 }
0x1356   :  { %2634 = vrot.lane.b32.xlu1 %v4432_v32, %s3862_s3 }
0x13c0   :  { %v2555_v0 = vpop.xlane.xlu0 %2554 }
0x13c1   :  { %v2570_v9 = vsub.f32 %v3437_v41, %v2555_v0 }
0x13c3   :  { %v2579_v6 = vmul.f32 1.442695, %v2570_v9 }
0x13c4   :  { %v2549_v5 = vpop.xlane.xlu0 %2548 }
0x13c5   :  { %3815 = vpow2.f32 %v2579_v6  ;;  %v2568_v53 = vsub.f32 %v2517_v26, %v2549_v5 }
0x13c6   :  { %v2552_v2 = vpop.xlane.xlu1 %2551 }
0x13c7   :  { %v2575_v57 = vmul.f32 1.442695, %v2568_v53  ;;  %v2569_v59 = vsub.f32 %v2520_v16, %v2552_v2  ;;  %v3849_v53 = vld [vmem:[%s4927_s4 + $0x8] sm:$0xff]  }
0x13c8   :  { %v2558_v18 = vpop.xlane.xlu0 %2557 }
0x13c9   :  { %3817 = vpow2.f32 %v2575_v57  ;;  %v2571_v3 = vsub.f32 %v3438_v35, %v2558_v18  ;;  %v2577_v63 = vmul.f32 1.442695, %v2569_v59  ;;  %v3850_v57 = vld [vmem:[%s4927_s4] sm:$0xff]  }
0x13ca   :  { %v2561_v45 = vpop.xlane.xlu1 %2560 }
0x13cb   :  { %v2581_v43 = vmul.f32 1.442695, %v2571_v3  ;;  %v2572_v24 = vsub.f32 %v2533_v46, %v2561_v45 }
0x13cd   :  { %3819 = vpow2.f32 %v2581_v43  ;;  %v2583_v36 = vmul.f32 1.442695, %v2572_v24 }
0x13ce   :  { %v2567_v34 = vpop.xlane.xlu1 %2566  ;;  %3821 = vpow2.f32 %v2577_v63  ;;  %v2564_v49 = vpop.xlane.xlu0 %2563 }
0x13cf   :  { %v2574_v32 = vsub.f32 %v3441_v19, %v2567_v34  ;;  %v2573_v0 = vsub.f32 %v2536_v11, %v2564_v49 }
0x13d1   :  { %v2587_v13 = vmul.f32 1.442695, %v2574_v32  ;;  %v2585_v9 = vmul.f32 1.442695, %v2573_v0 }
0x13d2   :  { %v4791_v38 = vpop.eup %3815  ;;  %v2635_v41 = vpop.permute.xlu1 %2634 }
0x13d3   :  { %3823 = vpow2.f32 %v2587_v13  ;;  %v2652_v47 = vsel %vm55_vm0, %v2635_v41, 0  ;;  %3510 = vmatprep.subr.msk.bf16.mxu1 %vm55_vm0, %v2635_v41  ;;  %v2595_v26 = vsel %vm282_vm3, %v4791_v38, 0.0 }
0x13d4   :  { %3444 = vmatpush3.bf16.msra.mxu1 %v2652_v47  ;;  %2596 = vadd.xlane.f32.xlu0 %v2595_v26  ;;  %3825 = vpow2.f32 %v2583_v36 }
0x13d5   :  { %3827 = vpow2.f32 %v2585_v9 }
0x13d6   :  { %v3818_v35 = vpop.eup %3817 }
0x13d7   :  { %v2589_v22 = vsel %vm282_vm3, %v3818_v35, 0.0 }
0x13d8   :  { %2590 = vadd.xlane.f32.xlu0 %v2589_v22 }
0x13da   :  { %v3820_v16 = vpop.eup %3819 }
0x13db   :  { %v2598_v58 = vsel %vm282_vm3, %v3820_v16, 0.0  ;;  %v3822_v19 = vpop.eup %3821 }
0x13dc   :  { %2599 = vadd.xlane.f32.xlu1 %v2598_v58  ;;  %v2592_v20 = vsel %vm282_vm3, %v3822_v19, 0.0 }
0x13e0   :  { %v4800_v46 = vpop.eup %3823  ;;  %2593 = vadd.xlane.f32.xlu1 %v2592_v20 }
0x13e1   :  { %v2607_v40 = vsel %vm301_vm4, %v4800_v46, 0.0  ;;  %v4804_v54 = vpop.eup %3825 }
0x13e2   :  { %2608 = vadd.xlane.f32.xlu0 %v2607_v40  ;;  %v2601_v8 = vsel %vm282_vm3, %v4804_v54, 0.0 }
0x13e6   :  { %2602 = vadd.xlane.f32.xlu0 %v2601_v8 }
0x13f1   :  { %2630 = vrot.lane.b32.xlu1 %v4419_v7, %s3862_s3  ;;  %v3828_v7 = vpop.eup %3827 }
0x13fc   :  { %2632 = vrot.lane.b32.xlu0 %v4430_v23, %s3862_s3  ;;  %v2604_v23 = vsel %vm282_vm3, %v3828_v7, 0.0 }
0x1400   :  { %3571 = vrot.lane.b32.xlu0 %v3570_v61, %s3863_s13 }
0x1404   :  { %3581 = vrot.lane.b32.xlu0 %v3580_v50, %s3864_s28 }
0x1408   :  { %3591 = vrot.lane.b32.xlu0 %v3590_v1, %s3863_s13 }
0x1415   :  { %2605 = vadd.xlane.f32.xlu1 %v2604_v23 }
0x1426   :  { %2628 = vrot.lane.b32.xlu1 %v4421_v56, %s3862_s3 }
0x142a   :  { %3576 = vrot.lane.b32.xlu1 %v3575_v14, %s3863_s13 }
0x142e   :  { %3586 = vrot.lane.b32.xlu1 %v3585_v55, %s3864_s28 }
0x1432   :  { %2737 = vrot.lane.b32.xlu1 %v4690_v60, %s3863_s13 }
0x145d   :  { %v2597_v12 = vpop.xlane.xlu0 %2596 }
0x1461   :  { %v2591_v25 = vpop.xlane.xlu0 %2590 }
0x1462   :  { %3829 = vrcp.f32 %v2591_v25 }
0x1465   :  { %v2600_v61 = vpop.xlane.xlu1 %2599 }
0x1469   :  { %v2594_v44 = vpop.xlane.xlu1 %2593 }
0x146a   :  { %3831 = vrcp.f32 %v2594_v44 }
0x146b   :  { %v2609_v56 = vpop.xlane.xlu0 %2608  ;;  %3833 = vrcp.f32 %v2600_v61 }
0x146c   :  { %3835 = vrcp.f32 %v2597_v12 }
0x146d   :  { %v2631_v62 = vpop.permute.xlu1 %2630  ;;  %3837 = vrcp.f32 %v2609_v56 }
0x146f   :  { %v2603_v52 = vpop.xlane.xlu0 %2602  ;;  %v3830_v10 = vpop.eup %3829 }
0x1470   :  { %v2611_v37 = vmul.f32 %v3830_v10, %v3818_v35  ;;  %3839 = vrcp.f32 %v2603_v52 }
0x1473   :  { %v2633_v1 = vpop.permute.xlu0 %2632 }
0x1474   :  { %3445 = vmatprep.subr.bf16.mxu1 %v2633_v1 }
0x1475   :  { %3446 = vmatpush3.bf16.msra.mxu1 %v2633_v1 }
0x1476   :  { %3447 = vmatprep.subr.bf16.mxu1 %v2631_v62 }
0x1477   :  { %v3832_v14 = vpop.eup %3831 }
0x1478   :  { %v2613_v42 = vmul.f32 %v3832_v14, %v3822_v19  ;;  %v3834_v60 = vpop.eup %3833  ;;  %v3572_v19 = vpop.permute.xlu0 %3571 }
0x1479   :  { %3448 = vmatpush3.bf16.msra.mxu1 %v2631_v62  ;;  %v3836_v27 = vpop.eup %3835  ;;  %v2617_v50 = vmul.f32 %v3834_v60, %v3820_v16 }
0x147a   :  { %v2624_v51 = vpack.c.bf16 %v2613_v42, %v2611_v37  ;;  %v2615_v6 = vmul.f32 %v3836_v27, %v4791_v38  ;;  %v3838_v2 = vpop.eup %3837 }
0x147b   :  { %v2623_v3 = vmul.f32 %v3838_v2, %v4800_v46 }
0x147c   :  { %3451 = vmatprep.mubr.msk.bf16.mxu1 %vm282_vm3, %v2624_v51  ;;  %v2625_v5 = vpack.c.bf16 %v2617_v50, %v2615_v6  ;;  %v3582_v46 = vpop.permute.xlu0 %3581 }
0x147d   :  { %v3840_v59 = vpop.eup %3839  ;;  %v2627_v24 = vpack.c.bf16 %v2623_v3, %v2623_v3  ;;  %v3583_v9 = vunpack.i.l.bf16 %v3582_v46 }
0x147e   :  { %v2619_v45 = vmul.f32 %v3840_v59, %v4804_v54  ;;  %v3573_v54 = vunpack.i.l.bf16 %v3572_v19 }
0x1480   :  { %v3592_v8 = vpop.permute.xlu0 %3591  ;;  %v2802_v61 = vsel %vm193_vm2, %v4602_v28, %v3573_v54 }
0x1481   :  { %v2809_v37 = vsel %vm1371_vm5, %v2802_v61, %v3583_v9  ;;  %v3594_v50 = vunpack.i.h.bf16 %v3592_v8 }
0x1483   :  { %v2807_v2 = vsel %vm193_vm2, %v4612_v30, %v3594_v50 }
0x149e   :  { %v2606_v55 = vpop.xlane.xlu1 %2605 }
0x149f   :  { %3841 = vrcp.f32 %v2606_v55 }
0x14a2   :  { %v2629_v11 = vpop.permute.xlu1 %2628 }
0x14a3   :  { %3449 = vmatprep.subr.bf16.mxu1 %v2629_v11 }
0x14a4   :  { %3450 = vmatpush3.bf16.msra.mxu1 %v2629_v11  ;;  %v3593_v11 = vunpack.i.l.bf16 %v3592_v8 }
0x14a5   :  { %3459 = vmatprep.subr.bf16.mxu1 %v3849_v53 }
0x14a6   :  { %v3577_v58 = vpop.permute.xlu1 %3576 }
0x14a7   :  { %3452 = vmatmul.mubr.msk.bf16.vlgmr.msra.gmra.mxu1 %vm282_vm3, %v2625_v5  ;;  %v3579_v49 = vunpack.i.h.bf16 %v3577_v58  ;;  %v3578_v0 = vunpack.i.l.bf16 %v3577_v58 }
0x14a8   :  { %3460 = vmatpush3.bf16.msra.mxu1 %v3849_v53 }
0x14a9   :  { %3461 = vmatprep.subr.bf16.mxu1 %v3850_v57  ;;  %v2805_v44 = vsel %vm193_vm2, %v4604_v29, %v3579_v49  ;;  %v2804_v56 = vsel %vm193_vm2, %v4600_v4, %v3578_v0 }
0x14aa   :  { %v3587_v20 = vpop.permute.xlu1 %3586 }
0x14ab   :  { %v3589_v33 = vunpack.i.h.bf16 %v3587_v20  ;;  %v3588_v39 = vunpack.i.l.bf16 %v3587_v20 }
0x14ac   :  { %v3842_v18 = vpop.eup %3841  ;;  %3462 = vmatpush3.bf16.msra.mxu1 %v3850_v57 }
0x14ad   :  { %v2621_v63 = vmul.f32 %v3842_v18, %v3828_v7  ;;  %v2811_v1 = vsel %vm1371_vm5, %v2804_v56, %v3588_v39  ;;  %v2812_v10 = vsel %vm1371_vm5, %v2805_v44, %v3589_v33  ;;  %v2806_v18 = vsel %vm193_vm2, %v4610_v15, %v3593_v11 }
0x14ae   :  { %v2738_v40 = vpop.permute.xlu1 %2737 }
0x14af   :  { %v2626_v43 = vpack.c.bf16 %v2621_v63, %v2619_v45  ;;  %v2808_v57 = vsel %vm193_vm2, %v4608_v17, %v2738_v40 }
0x14b1   :  { %3455 = vmatprep.mubr.msk.bf16.mxu1 %vm282_vm3, %v2626_v43 }
0x14b2   :  { %3456 = vmatmul.mubr.msk.bf16.gmra.mxu1 %vm282_vm3, %v2627_v24 }
0x1567   :  { %v3453_v34 = vpop.f32.mrf.mxu1 }
0x1569   :  { %v2688_v32 = vpop.f32.mrf.mxu1 }
0x156b   :  { %v3454_v36 = vpop.f32.mrf.mxu1 }
0x156c   :  { %v3595_v13 = vpack.i.bf16 %v3454_v36, %v3453_v34 }
0x156d   :  { %v2691_v38 = vpop.f32.mrf.mxu1 }
0x156e   :  { %v3600_v41 = vpack.i.bf16 %v2691_v38, %v2688_v32  ;;  %3596 = vrot.lane.b32.xlu1 %v3595_v13, %s3865_s8  ;;  %v3851_v13 = vld [vmem:[%s4928_s5] ss:$0 sm:$0xff] }
0x1570   :  { %3601 = vrot.lane.b32.xlu0 %v3600_v41, %s3865_s8 }
0x1572   :  { %2765 = vrot.lane.b32.xlu1 %v4774_v21, %s3864_s28  ;;  %v3457_v47 = vpop.f32.mrf.mxu1  ;;  %v3574_v21 = vunpack.i.h.bf16 %v3572_v19 }
0x1574   :  { %3606 = vrot.lane.b32.xlu0 %v3605_v48, %s3864_s28  ;;  %v2704_v26 = vpop.f32.mrf.mxu1  ;;  %v3584_v48 = vunpack.i.h.bf16 %v3582_v46  ;;  %v2803_v25 = vsel %vm193_vm2, %v4606_v31, %v3574_v21 }
0x1576   :  { %2793 = vrot.lane.b32.xlu1 %v3457_v47, %s3865_s8  ;;  %v3458_v35 = vpop.f32.mrf.mxu1  ;;  %v2810_v31 = vsel %vm1371_vm5, %v2803_v25, %v3584_v48 }
0x1578   :  { %v2707_v22 = vpop.f32.mrf.mxu1 }
0x1579   :  { %v3610_v16 = vpack.i.bf16 %v2707_v22, %v2704_v26 }
0x157b   :  { %3611 = vrot.lane.b32.xlu0 %v3610_v16, %s3865_s8 }
0x15e0   :  { %v3597_v7 = vpop.permute.xlu1 %3596 }
0x15e1   :  { %v3599_v23 = vunpack.i.h.bf16 %v3597_v7  ;;  %v3598_v12 = vunpack.i.l.bf16 %v3597_v7 }
0x15e2   :  { %v3602_v52 = vpop.permute.xlu0 %3601 }
0x15e3   :  { %v3604_v62 = vunpack.i.h.bf16 %v3602_v52  ;;  %v3603_v14 = vunpack.i.l.bf16 %v3602_v52  ;;  %v2819_v42 = vsel %vm1379_vm6, %v2812_v10, %v3599_v23  ;;  %v2818_v28 = vsel %vm1379_vm6, %v2811_v1, %v3598_v12 }
0x15e4   :  { %v2766_v60 = vpop.permute.xlu1 %2765  ;;  %v2824_v55 = vpack.c.bf16 %v2819_v42, %v2818_v28 }
0x15e5   :  { %v2816_v29 = vsel %vm1379_vm6, %v2809_v37, %v3603_v14  ;;  %v2817_v51 = vsel %vm1379_vm6, %v2810_v31, %v3604_v62  ;;  %v2815_v3 = vsel %vm1371_vm5, %v2808_v57, %v2766_v60 }
0x15e6   :  { %v2823_v4 = vpack.c.bf16 %v2817_v51, %v2816_v29  ;;  %v3607_v27 = vpop.permute.xlu0 %3606 }
0x15e7   :  { %v3609_v6 = vunpack.i.h.bf16 %v3607_v27  ;;  %v3608_v5 = vunpack.i.l.bf16 %v3607_v27 }
0x15e8   :  { %3463 = vmatprep.mubr.msk.bf16.mxu1 %vm100_vm1, %v2823_v4  ;;  %v2794_v53 = vpop.permute.xlu1 %2793 }
0x15e9   :  { %3464 = vmatmul.mubr.msk.bf16.vlgmr.msra.gmra.mxu1 %vm100_vm1, %v2824_v55  ;;  %v2813_v43 = vsel %vm1371_vm5, %v2806_v18, %v3608_v5  ;;  %v2814_v24 = vsel %vm1371_vm5, %v2807_v2, %v3609_v6  ;;  %v2822_v34 = vsel %vm1379_vm6, %v2815_v3, %v2794_v53 }
0x15ea   :  { %v2826_v17 = vpack.c.bf16 %v2822_v34, %v2822_v34 }
0x15ed   :  { %v3612_v59 = vpop.permute.xlu0 %3611 }
0x15ee   :  { %v3614_v45 = vunpack.i.h.bf16 %v3612_v59  ;;  %v3613_v63 = vunpack.i.l.bf16 %v3612_v59 }
0x15f0   :  { %v2820_v32 = vsel %vm1379_vm6, %v2813_v43, %v3613_v63  ;;  %v2821_v30 = vsel %vm1379_vm6, %v2814_v24, %v3614_v45 }
0x15f1   :  { %v2825_v36 = vpack.c.bf16 %v2821_v30, %v2820_v32 }
0x15f3   :  { %3467 = vmatprep.mubr.msk.bf16.mxu1 %vm100_vm1, %v2825_v36 }
0x15f4   :  { %3468 = vmatmul.mubr.msk.bf16.gmra.mxu1 %vm100_vm1, %v2826_v17 }
0x16a9   :  { %v3465_v15 = vpop.f32.mrf.mxu1 }
0x16aa   :  { %v2882_v38 = vadd.f32 %v3851_v13, %v3465_v15 }
0x16ab   :  { %v2873_v41 = vpop.f32.mrf.mxu1 }
0x16ac   :  { %3010 = vst.msk [vmem:[%s4929_s6 + $0x48] sm:$0xff] %vm100_vm1, %v2882_v38  ;;  %v2874_v47 = vadd.f32 %v3851_v13, %v2873_v41 }
0x16ad   :  { %v3466_v26 = vpop.f32.mrf.mxu1 }
0x16ae   :  { %3008 = vst.msk [vmem:[%s4929_s6 + $0x38] sm:$0xff] %vm100_vm1, %v2874_v47  ;;  %v2885_v35 = vadd.f32 %v3851_v13, %v3466_v26 }
0x16af   :  { %v2876_v22 = vpop.f32.mrf.mxu1 }
0x16b0   :  { %3011 = vst.msk [vmem:[%s4929_s6 + $0x50] sm:$0xff] %vm100_vm1, %v2885_v35  ;;  %v2877_v16 = vadd.f32 %v3851_v13, %v2876_v22 }
0x16b2   :  { %3009 = vst.msk [vmem:[%s4929_s6 + $0x40] sm:$0xff] %vm100_vm1, %v2877_v16 }
0x16b4   :  { %v3469_v58 = vpop.f32.mrf.mxu1 }
0x16b5   :  { %v2898_v19 = vadd.f32 %v3851_v13, %v3469_v58 }
0x16b6   :  { %v2889_v20 = vpop.f32.mrf.mxu1 }
0x16b7   :  { %3014 = vst.msk [vmem:[%s4929_s6 + $0x68] sm:$0x3] %vm1491_vm7, %v2898_v19  ;;  %v2890_v46 = vadd.f32 %v3851_v13, %v2889_v20 }
0x16b8   :  { %v3470_v40 = vpop.f32.mrf.mxu1 }
0x16b9   :  { %3012 = vst.msk [vmem:[%s4929_s6 + $0x58] sm:$0xff] %vm100_vm1, %v2890_v46 }
0x16ba   :  { %v2892_v21 = vpop.f32.mrf.mxu1 }
0x16bb   :  { %v2893_v54 = vadd.f32 %v3851_v13, %v2892_v21 }
0x16bd   :  { %3013 = vst.msk [vmem:[%s4929_s6 + $0x60] sm:$0xff] %vm100_vm1, %v2893_v54 }

</bundles_post_ra>
